<compile_context>
chip_gen: v7x
topology: tpu7x:2x2x1
jax: 0.10.0
libtpu: 0.0.40
codegen_flags: <defaults>
</compile_context>

<pallas_src>
import functools

import jax
import jax.numpy as jnp
from jax import lax
from jax.experimental import pallas as pl
from jax.experimental.pallas import tpu as pltpu


# ----------------------------------------------------------------------------
# Pallas kernels
# ----------------------------------------------------------------------------

def _matmul_affine_relu_kernel(x_ref, w_ref, scale_ref, bias_ref, o_ref):
    """Fused (1x1 / im2col-3x3) conv + folded BN + ReLU for one batch sample.

    x_ref: (1, K, HWp)  w_ref: (Cout, K)  scale/bias: (Cout, 1)  o_ref: (1, Cout, HWp)
    """
    x = x_ref[0]                                                     # (K, HWp)
    y = jnp.dot(w_ref[...], x, preferred_element_type=jnp.float32)   # (Cout, HWp)
    y = y * scale_ref[...] + bias_ref[...]
    o_ref[0] = jnp.maximum(y, 0.0).astype(o_ref.dtype)


def _make_maxpool_proj_kernel(cin):
    """Fused maxpool(3x3, s1, p1) -> 1x1 conv -> folded BN -> ReLU."""

    def kernel(p_ref, w_ref, scale_ref, bias_ref, o_ref):
        # p_ref: (1, 9*cin, HWp) im2col taps of the (-large padded) input.
        p = p_ref[0]
        m = p[0:cin, :]
        for k in range(1, 9):                     # static unroll: 3x3 max (VPU)
            m = jnp.maximum(m, p[k * cin:(k + 1) * cin, :])
        y = jnp.dot(w_ref[...], m, preferred_element_type=jnp.float32)
        y = y * scale_ref[...] + bias_ref[...]
        o_ref[0] = jnp.maximum(y, 0.0).astype(o_ref.dtype)

    return kernel


def _make_concat_se_kernel(hw_true):
    """Fused channel-concat + SE block for one batch tile.

    b*_ref: (TB, Ci, HWp) branch outputs; w1t: (Ctot, Cr); w2t: (Cr, Ctot);
    o_ref: (TB, Ctot, HWp).
    """
    inv_hw = 1.0 / float(hw_true)

    def kernel(b1_ref, b2_ref, b3_ref, b4_ref, w1t_ref, w2t_ref, o_ref):
        x = jnp.concatenate(
            [b1_ref[...], b2_ref[...], b3_ref[...], b4_ref[...]], axis=1)
        # Padded lanes are zero, so summing the padded block and dividing by the
        # true H*W gives the exact mean.
        pooled = jnp.sum(x.astype(jnp.float32), axis=-1) * inv_hw    # (TB, Ctot)
        h = jnp.dot(pooled, w1t_ref[...], preferred_element_type=jnp.float32)
        h = jnp.maximum(h, 0.0)                                      # (TB, Cr)
        s = jax.nn.sigmoid(jnp.dot(h, w2t_ref[...],
                                   preferred_element_type=jnp.float32))  # (TB, Ctot)
        o_ref[...] = (x * s[:, :, None].astype(x.dtype)).astype(o_ref.dtype)

    return kernel


# ----------------------------------------------------------------------------
# Wrappers around pallas_call
# ----------------------------------------------------------------------------

def _round_up(n, m):
    return ((n + m - 1) // m) * m


def _pad_lanes(x_flat):
    """Zero-pad the last (lane) dim of (B, C, HW) to a multiple of 128."""
    hw = x_flat.shape[-1]
    hwp = _round_up(hw, 128)
    if hwp != hw:
        x_flat = jnp.pad(x_flat, ((0, 0), (0, 0), (0, hwp - hw)))
    return x_flat, hwp


def _compiler_params(block_bytes, n_grid_axes=1):
    # Explicit, per-block-derived VMEM limit (kept well under v7x's 64 MiB).
    vmem_limit = int(min(max(8 * block_bytes, 16 * 1024 * 1024), 48 * 1024 * 1024))
    return pltpu.CompilerParams(
        dimension_semantics=("parallel",) * n_grid_axes,
        vmem_limit_bytes=vmem_limit)


def conv_bn_relu(x_flat, w2d, scale, bias):
    """x_flat: (B, K, HW); w2d: (Cout, K).  Returns (B, Cout, HW)."""
    B, K, HW = x_flat.shape
    xp, HWp = _pad_lanes(x_flat)
    Cout = w2d.shape[0]
    scale2 = scale.reshape(Cout, 1).astype(jnp.float32)
    bias2 = bias.reshape(Cout, 1).astype(jnp.float32)
    block_bytes = max(K, Cout) * HWp * xp.dtype.itemsize

    out = pl.pallas_call(
        _matmul_affine_relu_kernel,
        out_shape=jax.ShapeDtypeStruct((B, Cout, HWp), x_flat.dtype),
        grid_spec=pltpu.PrefetchScalarGridSpec(
            num_scalar_prefetch=0,
            grid=(B,),
            in_specs=[
                pl.BlockSpec((1, K, HWp), lambda b: (b, 0, 0)),
                pl.BlockSpec((Cout, K), lambda b: (0, 0)),
                pl.BlockSpec((Cout, 1), lambda b: (0, 0)),
                pl.BlockSpec((Cout, 1), lambda b: (0, 0)),
            ],
            out_specs=pl.BlockSpec((1, Cout, HWp), lambda b: (b, 0, 0)),
        ),
        compiler_params=_compiler_params(block_bytes),
    )(xp, w2d, scale2, bias2)
    return out[:, :, :HW]


def maxpool_proj_bn_relu(patches, cin, w2d, scale, bias):
    """patches: (B, 9*cin, HW) taps of the -large padded input; w2d: (Cout, cin)."""
    B, K9, HW = patches.shape
    xp, HWp = _pad_lanes(patches)
    Cout = w2d.shape[0]
    scale2 = scale.reshape(Cout, 1).astype(jnp.float32)
    bias2 = bias.reshape(Cout, 1).astype(jnp.float32)
    block_bytes = K9 * HWp * xp.dtype.itemsize

    out = pl.pallas_call(
        _make_maxpool_proj_kernel(cin),
        out_shape=jax.ShapeDtypeStruct((B, Cout, HWp), patches.dtype),
        grid_spec=pltpu.PrefetchScalarGridSpec(
            num_scalar_prefetch=0,
            grid=(B,),
            in_specs=[
                pl.BlockSpec((1, K9, HWp), lambda b: (b, 0, 0)),
                pl.BlockSpec((Cout, cin), lambda b: (0, 0)),
                pl.BlockSpec((Cout, 1), lambda b: (0, 0)),
                pl.BlockSpec((Cout, 1), lambda b: (0, 0)),
            ],
            out_specs=pl.BlockSpec((1, Cout, HWp), lambda b: (b, 0, 0)),
        ),
        compiler_params=_compiler_params(block_bytes),
    )(xp, w2d, scale2, bias2)
    return out[:, :, :HW]


def _choose_batch_tile(B, per_sample_bytes, target_bytes=2 * 1024 * 1024):
    """Largest batch tile within a ~2 MiB block budget, keeping >=2 grid steps
    (megacore) when the batch allows, and dividing B evenly."""
    tb = max(1, min(B, target_bytes // max(per_sample_bytes, 1)))
    if B >= 2:
        tb = max(1, min(tb, B // 2))
    while B % tb:
        tb -= 1
    return tb


def se_concat_apply(branches, w1t, w2t):
    """Fused channel-concat + SE on branch outputs [(B, Ci, HW)].

    w1t: (Ctot, Cr), w2t: (Cr, Ctot) pre-transposed once.
    Returns (B, Ctot, HW).
    """
    B, _, HW = branches[0].shape
    padded, HWp = [], None
    for b in branches:
        bp, HWp = _pad_lanes(b)
        padded.append(bp)
    Cs = [b.shape[1] for b in branches]
    Ctot = sum(Cs)
    itemsize = padded[0].dtype.itemsize
    tb = _choose_batch_tile(B, 2 * Ctot * HWp * itemsize)
    block_bytes = tb * Ctot * HWp * itemsize

    out = pl.pallas_call(
        _make_concat_se_kernel(HW),
        out_shape=jax.ShapeDtypeStruct((B, Ctot, HWp), branches[0].dtype),
        grid_spec=pltpu.PrefetchScalarGridSpec(
            num_scalar_prefetch=0,
            grid=(B // tb,),
            in_specs=[pl.BlockSpec((tb, c, HWp), lambda b: (b, 0, 0)) for c in Cs]
            + [
                pl.BlockSpec(w1t.shape, lambda b: (0, 0)),
                pl.BlockSpec(w2t.shape, lambda b: (0, 0)),
            ],
            out_specs=pl.BlockSpec((tb, Ctot, HWp), lambda b: (b, 0, 0)),
        ),
        compiler_params=_compiler_params(block_bytes),
    )(*padded, w1t, w2t)
    return out[:, :, :HW]


# ----------------------------------------------------------------------------
# Layout plumbing (wrapper-side, pure data movement) + full forward
# ----------------------------------------------------------------------------

def _im2col3x3(x_nchw, pad_value=0.0):
    """(B, C, H, W) -> (B, 9*C, H*W) taps ordered (dy, dx, c)."""
    B, C, H, W = x_nchw.shape
    xp = jnp.pad(x_nchw, ((0, 0), (0, 0), (1, 1), (1, 1)), constant_values=pad_value)
    taps = [xp[:, :, dy:dy + H, dx:dx + W] for dy in range(3) for dx in range(3)]
    return jnp.concatenate(taps, axis=1).reshape(B, 9 * C, H * W)


def inception_forward(x, prep, *, stem_splits):
    """Pallas forward of InceptionModule (eval-mode BN), x in NCHW."""
    B, Cin, H, W = x.shape
    HW = H * W
    x_flat = x.reshape(B, Cin, HW)
    c1, c2r, c3r = stem_splits

    # Fused stem: branch1 1x1 + branch2-reduce 1x1 + branch3-reduce 1x1 (one matmul).
    stem = conv_bn_relu(x_flat, prep['stem']['w'],
                        prep['stem']['scale'], prep['stem']['bias'])
    b1 = stem[:, :c1]
    b2r = stem[:, c1:c1 + c2r]
    b3r = stem[:, c1 + c2r:c1 + c2r + c3r]

    # Branch 2: 3x3 conv on the reduced features.
    b2 = conv_bn_relu(_im2col3x3(b2r.reshape(B, c2r, H, W)),
                      prep['b2']['w'], prep['b2']['scale'], prep['b2']['bias'])

    # Branch 3: 3x3 -> 3x3.
    b3a = conv_bn_relu(_im2col3x3(b3r.reshape(B, c3r, H, W)),
                       prep['b3a']['w'], prep['b3a']['scale'], prep['b3a']['bias'])
    b3 = conv_bn_relu(_im2col3x3(b3a.reshape(B, -1, H, W)),
                      prep['b3b']['w'], prep['b3b']['scale'], prep['b3b']['bias'])

    # Branch 4: maxpool(3x3, s1, p1) -> 1x1 proj (fused Pallas kernel).
    p4 = _im2col3x3(x, pad_value=float(jnp.finfo(x.dtype).min))
    b4 = maxpool_proj_bn_relu(p4, Cin, prep['b4']['w'],
                              prep['b4']['scale'], prep['b4']['bias'])

    # Fused channel concat + SE.
    out = se_concat_apply([b1, b2, b3, b4], prep['se']['w1t'], prep['se']['w2t'])
    return out.reshape(B, -1, H, W)


# ----------------------------------------------------------------------------
# Parameters (PyTorch-layout) + one-time preparation (fold BN, flatten, stack)
# ----------------------------------------------------------------------------

def _conv_bn_params(key, cout, cin, k):
    kw, kb, kg, kbe, km, kv = jax.random.split(key, 6)
    w = jax.random.normal(kw, (cout, cin, k, k), jnp.float32) * (0.3 / (cin * k * k) ** 0.5)
    b = jax.random.normal(kb, (cout,), jnp.float32) * 0.05
    gamma = 1.0 + 0.1 * jax.random.normal(kg, (cout,), jnp.float32)
    beta = 0.1 * jax.random.normal(kbe, (cout,), jnp.float32)
    mean = 0.1 * jax.random.normal(km, (cout,), jnp.float32)
    var = jax.random.uniform(kv, (cout,), jnp.float32, minval=0.5, maxval=1.5)
    return dict(w=w, b=b, gamma=gamma, beta=beta, mean=mean, var=var)


def init_raw_params(key, cin, ch1x1, ch3red, ch3, ch5red, ch5, pool_proj, reduction=16):
    ks = jax.random.split(key, 8)
    raw = {
        'b1':  _conv_bn_params(ks[0], ch1x1, cin, 1),
        'b2r': _conv_bn_params(ks[1], ch3red, cin, 1),
        'b2':  _conv_bn_params(ks[2], ch3, ch3red, 3),
        'b3r': _conv_bn_params(ks[3], ch5red, cin, 1),
        'b3a': _conv_bn_params(ks[4], ch5red, ch5red, 3),
        'b3b': _conv_bn_params(ks[5], ch5, ch5red, 3),
        'b4':  _conv_bn_params(ks[6], pool_proj, cin, 1),
    }
    ctot = ch1x1 + ch3 + ch5 + pool_proj
    cr = ctot // reduction
    k1, k2 = jax.random.split(ks[7])
    raw['se'] = {'w1': jax.random.normal(k1, (cr, ctot), jnp.float32) * 0.2,
                 'w2': jax.random.normal(k2, (ctot, cr), jnp.float32) * 0.2}
    return raw


def prepare_params(raw, eps=1e-5):
    """One-time prep outside the hot path: fold conv bias + eval BN into
    scale/bias, flatten conv weights to matmul layout, stack the three input-fed
    1x1 convs into one "stem" matmul, pre-transpose SE weights.

    Returns (prep, stem_splits) where stem_splits are static channel counts.
    """
    folded = {}
    for name, layer in raw.items():
        if name == 'se':
            continue
        scale = layer['gamma'] / jnp.sqrt(layer['var'] + eps)
        bias = layer['beta'] + scale * (layer['b'] - layer['mean'])
        w = layer['w']
        cout, cin_k, kh, kw = w.shape
        if kh == 1:
            w2d = w.reshape(cout, cin_k)
        else:  # match im2col tap order (dy, dx, c)
            w2d = w.transpose(0, 2, 3, 1).reshape(cout, kh * kw * cin_k)
        folded[name] = {'w': w2d, 'scale': scale, 'bias': bias}

    stem_names = ('b1', 'b2r', 'b3r')
    stem_splits = tuple(int(folded[n]['w'].shape[0]) for n in stem_names)
    prep = {
        'stem': {
            'w': jnp.concatenate([folded[n]['w'] for n in stem_names], axis=0),
            'scale': jnp.concatenate([folded[n]['scale'] for n in stem_names], axis=0),
            'bias': jnp.concatenate([folded[n]['bias'] for n in stem_names], axis=0),
        },
        'b2': folded['b2'], 'b3a': folded['b3a'], 'b3b': folded['b3b'],
        'b4': folded['b4'],
        'se': {'w1t': raw['se']['w1'].T, 'w2t': raw['se']['w2'].T},
    }
    return prep, stem_splits


# ----------------------------------------------------------------------------
# Pure-JAX reference (mirrors the PyTorch module, eval-mode BN)
# ----------------------------------------------------------------------------

def inception_ref(x, raw, eps=1e-5):
    def cbr(inp, layer, pad):
        y = lax.conv_general_dilated(
            inp, layer['w'], window_strides=(1, 1),
            padding=[(pad, pad), (pad, pad)],
            dimension_numbers=('NCHW', 'OIHW', 'NCHW'),
            precision=lax.Precision.HIGHEST)
        y = y + layer['b'][None, :, None, None]
        y = (layer['gamma'][None, :, None, None]
             * (y - layer['mean'][None, :, None, None])
             / jnp.sqrt(layer['var'][None, :, None, None] + eps)
             + layer['beta'][None, :, None, None])
        return jnp.maximum(y, 0.0)

    b1 = cbr(x, raw['b1'], 0)
    b2 = cbr(cbr(x, raw['b2r'], 0), raw['b2'], 1)
    b3 = cbr(cbr(cbr(x, raw['b3r'], 0), raw['b3a'], 1), raw['b3b'], 1)
    xpool = lax.reduce_window(x, -jnp.inf, lax.max,
                              (1, 1, 3, 3), (1, 1, 1, 1),
                              ((0, 0), (0, 0), (1, 1), (1, 1)))
    b4 = cbr(xpool, raw['b4'], 0)
    comb = jnp.concatenate([b1, b2, b3, b4], axis=1)

    y = jnp.mean(comb, axis=(2, 3))
    y = jnp.maximum(y @ raw['se']['w1'].T, 0.0)
    y = jax.nn.sigmoid(y @ raw['se']['w2'].T)
    return comb * y[:, :, None, None]


# ----------------------------------------------------------------------------
# Demo
# ----------------------------------------------------------------------------

if __name__ == "__main__":
    B, Cin, H, W = 2, 16, 16, 16                      # HW = 256 (lane-dense)
    ch1x1, ch3red, ch3, ch5red, ch5, pool_proj = 8, 8, 16, 8, 8, 8
    Ctot = ch1x1 + ch3 + ch5 + pool_proj              # 40 channels after concat

    key = jax.random.PRNGKey(0)
    kx, kp = jax.random.split(key)
    x = jax.random.normal(kx, (B, Cin, H, W), dtype=jnp.float32)

    raw = init_raw_params(kp, Cin, ch1x1, ch3red, ch3, ch5red, ch5, pool_proj)
    prep, stem_splits = prepare_params(raw)           # done once, off the hot path

    fwd = jax.jit(functools.partial(inception_forward, stem_splits=stem_splits))
    out = jax.block_until_ready(fwd(x, prep))

    ref = inception_ref(x, raw)
    assert out.shape == (B, Ctot, H, W)
    max_err = float(jnp.max(jnp.abs(out - ref)))
    assert jnp.allclose(out, ref, atol=5e-3, rtol=5e-3), f"max abs err = {max_err}"

    print("KERNEL_OK")
</pallas_src>

<mosaic_0001>
module attributes {stable_mosaic.version = 11 : i64} {
  func.func @_matmul_affine_relu_kernel(%arg0: i32, %arg1: memref<1x16x256xf32, #tpu.memory_space<vmem>>, %arg2: memref<24x16xf32, #tpu.memory_space<vmem>>, %arg3: memref<24x1xf32, #tpu.memory_space<vmem>>, %arg4: memref<24x1xf32, #tpu.memory_space<vmem>>, %arg5: memref<1x24x256xf32, #tpu.memory_space<vmem>>) attributes {dimension_semantics = [#tpu.dimension_semantics<parallel>], iteration_bounds = array<i64: 2>, scalar_prefetch = 0 : i64, scratch_operands = 0 : i64, tpu.core_type = #tpu.core_type<tc>, window_params = [{transform_indices = @transform_0, window_bounds = array<i64: 1, 16, 256>}, {pipeline_mode = #tpu.pipeline_mode<synchronous>, transform_indices = @transform_1, window_bounds = array<i64: 24, 16>}, {pipeline_mode = #tpu.pipeline_mode<synchronous>, transform_indices = @transform_2, window_bounds = array<i64: 24, 1>}, {pipeline_mode = #tpu.pipeline_mode<synchronous>, transform_indices = @transform_3, window_bounds = array<i64: 24, 1>}, {transform_indices = @transform_4, window_bounds = array<i64: 1, 24, 256>}]} {
    %c0 = arith.constant 0 : index
    %c0_0 = arith.constant 0 : index
    %c0_1 = arith.constant 0 : index
    %0 = vector.load %arg1[%c0, %c0_0, %c0_1] : memref<1x16x256xf32, #tpu.memory_space<vmem>>, vector<1x16x256xf32>
    %1 = vector.shape_cast %0 : vector<1x16x256xf32> to vector<16x256xf32>
    %c0_2 = arith.constant 0 : index
    %c0_3 = arith.constant 0 : index
    %2 = vector.load %arg2[%c0_2, %c0_3] : memref<24x16xf32, #tpu.memory_space<vmem>>, vector<24x16xf32>
    %cst = arith.constant dense<0.000000e+00> : vector<24x256xf32>
    %3 = tpu.matmul %2, %1, %cst {dimension_numbers = #tpu.dot_dimension_numbers<[1], [0], [0], [1], [0, 0, 1, 1], [], []>} : vector<24x16xf32>, vector<16x256xf32>, vector<24x256xf32> -> vector<24x256xf32>
    %c0_4 = arith.constant 0 : index
    %c0_5 = arith.constant 0 : index
    %4 = vector.load %arg3[%c0_4, %c0_5] : memref<24x1xf32, #tpu.memory_space<vmem>>, vector<24x1xf32>
    %5 = vector.broadcast %4 : vector<24x1xf32> to vector<24x256xf32>
    %6 = arith.mulf %3, %5 : vector<24x256xf32>
    %c0_6 = arith.constant 0 : index
    %c0_7 = arith.constant 0 : index
    %7 = vector.load %arg4[%c0_6, %c0_7] : memref<24x1xf32, #tpu.memory_space<vmem>>, vector<24x1xf32>
    %8 = vector.broadcast %7 : vector<24x1xf32> to vector<24x256xf32>
    %9 = arith.addf %6, %8 : vector<24x256xf32>
    %cst_8 = arith.constant 0.000000e+00 : f32
    %10 = vector.broadcast %cst_8 : f32 to vector<24x256xf32>
    %11 = arith.maximumf %9, %10 : vector<24x256xf32>
    %c0_9 = arith.constant 0 : index
    %c0_10 = arith.constant 0 : index
    %c0_11 = arith.constant 0 : index
    %12 = vector.load %arg5[%c0_9, %c0_10, %c0_11] : memref<1x24x256xf32, #tpu.memory_space<vmem>>, vector<1x24x256xf32>
    %13 = vector.shape_cast %12 : vector<1x24x256xf32> to vector<24x256xf32>
    %14 = vector.shape_cast %11 : vector<24x256xf32> to vector<1x24x256xf32>
    tpu.vector_store %arg5[%c0_9, %c0_10, %c0_11], %14 {strides = array<i32>} : memref<1x24x256xf32, #tpu.memory_space<vmem>>, vector<1x24x256xf32>,
    return
  }
  func.func @transform_0(%arg0: i32) -> (i32, i32, i32) {
    %c0_i32 = arith.constant 0 : i32
    %c0_i32_0 = arith.constant 0 : i32
    %c0_i32_1 = arith.constant 0 : i32
    return %arg0, %c0_i32, %c0_i32_0 : i32, i32, i32
  }
  func.func @transform_1(%arg0: i32) -> (i32, i32) {
    %c0_i32 = arith.constant 0 : i32
    %c0_i32_0 = arith.constant 0 : i32
    %c0_i32_1 = arith.constant 0 : i32
    return %c0_i32, %c0_i32_0 : i32, i32
  }
  func.func @transform_2(%arg0: i32) -> (i32, i32) {
    %c0_i32 = arith.constant 0 : i32
    %c0_i32_0 = arith.constant 0 : i32
    %c0_i32_1 = arith.constant 0 : i32
    return %c0_i32, %c0_i32_0 : i32, i32
  }
  func.func @transform_3(%arg0: i32) -> (i32, i32) {
    %c0_i32 = arith.constant 0 : i32
    %c0_i32_0 = arith.constant 0 : i32
    %c0_i32_1 = arith.constant 0 : i32
    return %c0_i32, %c0_i32_0 : i32, i32
  }
  func.func @transform_4(%arg0: i32) -> (i32, i32, i32) {
    %c0_i32 = arith.constant 0 : i32
    %c0_i32_0 = arith.constant 0 : i32
    %c0_i32_1 = arith.constant 0 : i32
    return %arg0, %c0_i32, %c0_i32_0 : i32, i32, i32
  }
}

module attributes {stable_mosaic.version = 11 : i64} {
  func.func @_matmul_affine_relu_kernel(%arg0: i32, %arg1: memref<1x72x256xf32, #tpu.memory_space<vmem>>, %arg2: memref<8x72xf32, #tpu.memory_space<vmem>>, %arg3: memref<8x1xf32, #tpu.memory_space<vmem>>, %arg4: memref<8x1xf32, #tpu.memory_space<vmem>>, %arg5: memref<1x8x256xf32, #tpu.memory_space<vmem>>) attributes {dimension_semantics = [#tpu.dimension_semantics<parallel>], iteration_bounds = array<i64: 2>, scalar_prefetch = 0 : i64, scratch_operands = 0 : i64, tpu.core_type = #tpu.core_type<tc>, window_params = [{transform_indices = @transform_0, window_bounds = array<i64: 1, 72, 256>}, {pipeline_mode = #tpu.pipeline_mode<synchronous>, transform_indices = @transform_1, window_bounds = array<i64: 8, 72>}, {pipeline_mode = #tpu.pipeline_mode<synchronous>, transform_indices = @transform_2, window_bounds = array<i64: 8, 1>}, {pipeline_mode = #tpu.pipeline_mode<synchronous>, transform_indices = @transform_3, window_bounds = array<i64: 8, 1>}, {transform_indices = @transform_4, window_bounds = array<i64: 1, 8, 256>}]} {
    %c0 = arith.constant 0 : index
    %c0_0 = arith.constant 0 : index
    %c0_1 = arith.constant 0 : index
    %0 = vector.load %arg1[%c0, %c0_0, %c0_1] : memref<1x72x256xf32, #tpu.memory_space<vmem>>, vector<1x72x256xf32>
    %1 = vector.shape_cast %0 : vector<1x72x256xf32> to vector<72x256xf32>
    %c0_2 = arith.constant 0 : index
    %c0_3 = arith.constant 0 : index
    %2 = vector.load %arg2[%c0_2, %c0_3] : memref<8x72xf32, #tpu.memory_space<vmem>>, vector<8x72xf32>
    %cst = arith.constant dense<0.000000e+00> : vector<8x256xf32>
    %3 = tpu.matmul %2, %1, %cst {dimension_numbers = #tpu.dot_dimension_numbers<[1], [0], [0], [1], [0, 0, 1, 1], [], []>} : vector<8x72xf32>, vector<72x256xf32>, vector<8x256xf32> -> vector<8x256xf32>
    %c0_4 = arith.constant 0 : index
    %c0_5 = arith.constant 0 : index
    %4 = vector.load %arg3[%c0_4, %c0_5] : memref<8x1xf32, #tpu.memory_space<vmem>>, vector<8x1xf32>
    %5 = vector.broadcast %4 : vector<8x1xf32> to vector<8x256xf32>
    %6 = arith.mulf %3, %5 : vector<8x256xf32>
    %c0_6 = arith.constant 0 : index
    %c0_7 = arith.constant 0 : index
    %7 = vector.load %arg4[%c0_6, %c0_7] : memref<8x1xf32, #tpu.memory_space<vmem>>, vector<8x1xf32>
    %8 = vector.broadcast %7 : vector<8x1xf32> to vector<8x256xf32>
    %9 = arith.addf %6, %8 : vector<8x256xf32>
    %cst_8 = arith.constant 0.000000e+00 : f32
    %10 = vector.broadcast %cst_8 : f32 to vector<8x256xf32>
    %11 = arith.maximumf %9, %10 : vector<8x256xf32>
    %c0_9 = arith.constant 0 : index
    %c0_10 = arith.constant 0 : index
    %c0_11 = arith.constant 0 : index
    %12 = vector.load %arg5[%c0_9, %c0_10, %c0_11] : memref<1x8x256xf32, #tpu.memory_space<vmem>>, vector<1x8x256xf32>
    %13 = vector.shape_cast %12 : vector<1x8x256xf32> to vector<8x256xf32>
    %14 = vector.shape_cast %11 : vector<8x256xf32> to vector<1x8x256xf32>
    tpu.vector_store %arg5[%c0_9, %c0_10, %c0_11], %14 {strides = array<i32>} : memref<1x8x256xf32, #tpu.memory_space<vmem>>, vector<1x8x256xf32>,
    return
  }
  func.func @transform_0(%arg0: i32) -> (i32, i32, i32) {
    %c0_i32 = arith.constant 0 : i32
    %c0_i32_0 = arith.constant 0 : i32
    %c0_i32_1 = arith.constant 0 : i32
    return %arg0, %c0_i32, %c0_i32_0 : i32, i32, i32
  }
  func.func @transform_1(%arg0: i32) -> (i32, i32) {
    %c0_i32 = arith.constant 0 : i32
    %c0_i32_0 = arith.constant 0 : i32
    %c0_i32_1 = arith.constant 0 : i32
    return %c0_i32, %c0_i32_0 : i32, i32
  }
  func.func @transform_2(%arg0: i32) -> (i32, i32) {
    %c0_i32 = arith.constant 0 : i32
    %c0_i32_0 = arith.constant 0 : i32
    %c0_i32_1 = arith.constant 0 : i32
    return %c0_i32, %c0_i32_0 : i32, i32
  }
  func.func @transform_3(%arg0: i32) -> (i32, i32) {
    %c0_i32 = arith.constant 0 : i32
    %c0_i32_0 = arith.constant 0 : i32
    %c0_i32_1 = arith.constant 0 : i32
    return %c0_i32, %c0_i32_0 : i32, i32
  }
  func.func @transform_4(%arg0: i32) -> (i32, i32, i32) {
    %c0_i32 = arith.constant 0 : i32
    %c0_i32_0 = arith.constant 0 : i32
    %c0_i32_1 = arith.constant 0 : i32
    return %arg0, %c0_i32, %c0_i32_0 : i32, i32, i32
  }
}

module attributes {stable_mosaic.version = 11 : i64} {
  func.func @_matmul_affine_relu_kernel(%arg0: i32, %arg1: memref<1x72x256xf32, #tpu.memory_space<vmem>>, %arg2: memref<16x72xf32, #tpu.memory_space<vmem>>, %arg3: memref<16x1xf32, #tpu.memory_space<vmem>>, %arg4: memref<16x1xf32, #tpu.memory_space<vmem>>, %arg5: memref<1x16x256xf32, #tpu.memory_space<vmem>>) attributes {dimension_semantics = [#tpu.dimension_semantics<parallel>], iteration_bounds = array<i64: 2>, scalar_prefetch = 0 : i64, scratch_operands = 0 : i64, tpu.core_type = #tpu.core_type<tc>, window_params = [{transform_indices = @transform_0, window_bounds = array<i64: 1, 72, 256>}, {pipeline_mode = #tpu.pipeline_mode<synchronous>, transform_indices = @transform_1, window_bounds = array<i64: 16, 72>}, {pipeline_mode = #tpu.pipeline_mode<synchronous>, transform_indices = @transform_2, window_bounds = array<i64: 16, 1>}, {pipeline_mode = #tpu.pipeline_mode<synchronous>, transform_indices = @transform_3, window_bounds = array<i64: 16, 1>}, {transform_indices = @transform_4, window_bounds = array<i64: 1, 16, 256>}]} {
    %c0 = arith.constant 0 : index
    %c0_0 = arith.constant 0 : index
    %c0_1 = arith.constant 0 : index
    %0 = vector.load %arg1[%c0, %c0_0, %c0_1] : memref<1x72x256xf32, #tpu.memory_space<vmem>>, vector<1x72x256xf32>
    %1 = vector.shape_cast %0 : vector<1x72x256xf32> to vector<72x256xf32>
    %c0_2 = arith.constant 0 : index
    %c0_3 = arith.constant 0 : index
    %2 = vector.load %arg2[%c0_2, %c0_3] : memref<16x72xf32, #tpu.memory_space<vmem>>, vector<16x72xf32>
    %cst = arith.constant dense<0.000000e+00> : vector<16x256xf32>
    %3 = tpu.matmul %2, %1, %cst {dimension_numbers = #tpu.dot_dimension_numbers<[1], [0], [0], [1], [0, 0, 1, 1], [], []>} : vector<16x72xf32>, vector<72x256xf32>, vector<16x256xf32> -> vector<16x256xf32>
    %c0_4 = arith.constant 0 : index
    %c0_5 = arith.constant 0 : index
    %4 = vector.load %arg3[%c0_4, %c0_5] : memref<16x1xf32, #tpu.memory_space<vmem>>, vector<16x1xf32>
    %5 = vector.broadcast %4 : vector<16x1xf32> to vector<16x256xf32>
    %6 = arith.mulf %3, %5 : vector<16x256xf32>
    %c0_6 = arith.constant 0 : index
    %c0_7 = arith.constant 0 : index
    %7 = vector.load %arg4[%c0_6, %c0_7] : memref<16x1xf32, #tpu.memory_space<vmem>>, vector<16x1xf32>
    %8 = vector.broadcast %7 : vector<16x1xf32> to vector<16x256xf32>
    %9 = arith.addf %6, %8 : vector<16x256xf32>
    %cst_8 = arith.constant 0.000000e+00 : f32
    %10 = vector.broadcast %cst_8 : f32 to vector<16x256xf32>
    %11 = arith.maximumf %9, %10 : vector<16x256xf32>
    %c0_9 = arith.constant 0 : index
    %c0_10 = arith.constant 0 : index
    %c0_11 = arith.constant 0 : index
    %12 = vector.load %arg5[%c0_9, %c0_10, %c0_11] : memref<1x16x256xf32, #tpu.memory_space<vmem>>, vector<1x16x256xf32>
    %13 = vector.shape_cast %12 : vector<1x16x256xf32> to vector<16x256xf32>
    %14 = vector.shape_cast %11 : vector<16x256xf32> to vector<1x16x256xf32>
    tpu.vector_store %arg5[%c0_9, %c0_10, %c0_11], %14 {strides = array<i32>} : memref<1x16x256xf32, #tpu.memory_space<vmem>>, vector<1x16x256xf32>,
    return
  }
  func.func @transform_0(%arg0: i32) -> (i32, i32, i32) {
    %c0_i32 = arith.constant 0 : i32
    %c0_i32_0 = arith.constant 0 : i32
    %c0_i32_1 = arith.constant 0 : i32
    return %arg0, %c0_i32, %c0_i32_0 : i32, i32, i32
  }
  func.func @transform_1(%arg0: i32) -> (i32, i32) {
    %c0_i32 = arith.constant 0 : i32
    %c0_i32_0 = arith.constant 0 : i32
    %c0_i32_1 = arith.constant 0 : i32
    return %c0_i32, %c0_i32_0 : i32, i32
  }
  func.func @transform_2(%arg0: i32) -> (i32, i32) {
    %c0_i32 = arith.constant 0 : i32
    %c0_i32_0 = arith.constant 0 : i32
    %c0_i32_1 = arith.constant 0 : i32
    return %c0_i32, %c0_i32_0 : i32, i32
  }
  func.func @transform_3(%arg0: i32) -> (i32, i32) {
    %c0_i32 = arith.constant 0 : i32
    %c0_i32_0 = arith.constant 0 : i32
    %c0_i32_1 = arith.constant 0 : i32
    return %c0_i32, %c0_i32_0 : i32, i32
  }
  func.func @transform_4(%arg0: i32) -> (i32, i32, i32) {
    %c0_i32 = arith.constant 0 : i32
    %c0_i32_0 = arith.constant 0 : i32
    %c0_i32_1 = arith.constant 0 : i32
    return %arg0, %c0_i32, %c0_i32_0 : i32, i32, i32
  }
}

module attributes {stable_mosaic.version = 11 : i64} {
  func.func @kernel(%arg0: i32, %arg1: memref<1x144x256xf32, #tpu.memory_space<vmem>>, %arg2: memref<8x16xf32, #tpu.memory_space<vmem>>, %arg3: memref<8x1xf32, #tpu.memory_space<vmem>>, %arg4: memref<8x1xf32, #tpu.memory_space<vmem>>, %arg5: memref<1x8x256xf32, #tpu.memory_space<vmem>>) attributes {dimension_semantics = [#tpu.dimension_semantics<parallel>], iteration_bounds = array<i64: 2>, scalar_prefetch = 0 : i64, scratch_operands = 0 : i64, tpu.core_type = #tpu.core_type<tc>, window_params = [{transform_indices = @transform_0, window_bounds = array<i64: 1, 144, 256>}, {pipeline_mode = #tpu.pipeline_mode<synchronous>, transform_indices = @transform_1, window_bounds = array<i64: 8, 16>}, {pipeline_mode = #tpu.pipeline_mode<synchronous>, transform_indices = @transform_2, window_bounds = array<i64: 8, 1>}, {pipeline_mode = #tpu.pipeline_mode<synchronous>, transform_indices = @transform_3, window_bounds = array<i64: 8, 1>}, {transform_indices = @transform_4, window_bounds = array<i64: 1, 8, 256>}]} {
    %c0 = arith.constant 0 : index
    %c0_0 = arith.constant 0 : index
    %c0_1 = arith.constant 0 : index
    %0 = vector.load %arg1[%c0, %c0_0, %c0_1] : memref<1x144x256xf32, #tpu.memory_space<vmem>>, vector<1x144x256xf32>
    %1 = vector.shape_cast %0 : vector<1x144x256xf32> to vector<144x256xf32>
    %2 = vector.extract_strided_slice %1 {offsets = [0, 0], sizes = [16, 256], strides = [1, 1]} : vector<144x256xf32> to vector<16x256xf32>
    %3 = vector.extract_strided_slice %1 {offsets = [16, 0], sizes = [16, 256], strides = [1, 1]} : vector<144x256xf32> to vector<16x256xf32>
    %4 = arith.maximumf %2, %3 : vector<16x256xf32>
    %5 = vector.extract_strided_slice %1 {offsets = [32, 0], sizes = [16, 256], strides = [1, 1]} : vector<144x256xf32> to vector<16x256xf32>
    %6 = arith.maximumf %4, %5 : vector<16x256xf32>
    %7 = vector.extract_strided_slice %1 {offsets = [48, 0], sizes = [16, 256], strides = [1, 1]} : vector<144x256xf32> to vector<16x256xf32>
    %8 = arith.maximumf %6, %7 : vector<16x256xf32>
    %9 = vector.extract_strided_slice %1 {offsets = [64, 0], sizes = [16, 256], strides = [1, 1]} : vector<144x256xf32> to vector<16x256xf32>
    %10 = arith.maximumf %8, %9 : vector<16x256xf32>
    %11 = vector.extract_strided_slice %1 {offsets = [80, 0], sizes = [16, 256], strides = [1, 1]} : vector<144x256xf32> to vector<16x256xf32>
    %12 = arith.maximumf %10, %11 : vector<16x256xf32>
    %13 = vector.extract_strided_slice %1 {offsets = [96, 0], sizes = [16, 256], strides = [1, 1]} : vector<144x256xf32> to vector<16x256xf32>
    %14 = arith.maximumf %12, %13 : vector<16x256xf32>
    %15 = vector.extract_strided_slice %1 {offsets = [112, 0], sizes = [16, 256], strides = [1, 1]} : vector<144x256xf32> to vector<16x256xf32>
    %16 = arith.maximumf %14, %15 : vector<16x256xf32>
    %17 = vector.extract_strided_slice %1 {offsets = [128, 0], sizes = [16, 256], strides = [1, 1]} : vector<144x256xf32> to vector<16x256xf32>
    %18 = arith.maximumf %16, %17 : vector<16x256xf32>
    %c0_2 = arith.constant 0 : index
    %c0_3 = arith.constant 0 : index
    %19 = vector.load %arg2[%c0_2, %c0_3] : memref<8x16xf32, #tpu.memory_space<vmem>>, vector<8x16xf32>
    %cst = arith.constant dense<0.000000e+00> : vector<8x256xf32>
    %20 = tpu.matmul %19, %18, %cst {dimension_numbers = #tpu.dot_dimension_numbers<[1], [0], [0], [1], [0, 0, 1, 1], [], []>} : vector<8x16xf32>, vector<16x256xf32>, vector<8x256xf32> -> vector<8x256xf32>
    %c0_4 = arith.constant 0 : index
    %c0_5 = arith.constant 0 : index
    %21 = vector.load %arg3[%c0_4, %c0_5] : memref<8x1xf32, #tpu.memory_space<vmem>>, vector<8x1xf32>
    %22 = vector.broadcast %21 : vector<8x1xf32> to vector<8x256xf32>
    %23 = arith.mulf %20, %22 : vector<8x256xf32>
    %c0_6 = arith.constant 0 : index
    %c0_7 = arith.constant 0 : index
    %24 = vector.load %arg4[%c0_6, %c0_7] : memref<8x1xf32, #tpu.memory_space<vmem>>, vector<8x1xf32>
    %25 = vector.broadcast %24 : vector<8x1xf32> to vector<8x256xf32>
    %26 = arith.addf %23, %25 : vector<8x256xf32>
    %cst_8 = arith.constant 0.000000e+00 : f32
    %27 = vector.broadcast %cst_8 : f32 to vector<8x256xf32>
    %28 = arith.maximumf %26, %27 : vector<8x256xf32>
    %c0_9 = arith.constant 0 : index
    %c0_10 = arith.constant 0 : index
    %c0_11 = arith.constant 0 : index
    %29 = vector.load %arg5[%c0_9, %c0_10, %c0_11] : memref<1x8x256xf32, #tpu.memory_space<vmem>>, vector<1x8x256xf32>
    %30 = vector.shape_cast %29 : vector<1x8x256xf32> to vector<8x256xf32>
    %31 = vector.shape_cast %28 : vector<8x256xf32> to vector<1x8x256xf32>
    tpu.vector_store %arg5[%c0_9, %c0_10, %c0_11], %31 {strides = array<i32>} : memref<1x8x256xf32, #tpu.memory_space<vmem>>, vector<1x8x256xf32>,
    return
  }
  func.func @transform_0(%arg0: i32) -> (i32, i32, i32) {
    %c0_i32 = arith.constant 0 : i32
    %c0_i32_0 = arith.constant 0 : i32
    %c0_i32_1 = arith.constant 0 : i32
    return %arg0, %c0_i32, %c0_i32_0 : i32, i32, i32
  }
  func.func @transform_1(%arg0: i32) -> (i32, i32) {
    %c0_i32 = arith.constant 0 : i32
    %c0_i32_0 = arith.constant 0 : i32
    %c0_i32_1 = arith.constant 0 : i32
    return %c0_i32, %c0_i32_0 : i32, i32
  }
  func.func @transform_2(%arg0: i32) -> (i32, i32) {
    %c0_i32 = arith.constant 0 : i32
    %c0_i32_0 = arith.constant 0 : i32
    %c0_i32_1 = arith.constant 0 : i32
    return %c0_i32, %c0_i32_0 : i32, i32
  }
  func.func @transform_3(%arg0: i32) -> (i32, i32) {
    %c0_i32 = arith.constant 0 : i32
    %c0_i32_0 = arith.constant 0 : i32
    %c0_i32_1 = arith.constant 0 : i32
    return %c0_i32, %c0_i32_0 : i32, i32
  }
  func.func @transform_4(%arg0: i32) -> (i32, i32, i32) {
    %c0_i32 = arith.constant 0 : i32
    %c0_i32_0 = arith.constant 0 : i32
    %c0_i32_1 = arith.constant 0 : i32
    return %arg0, %c0_i32, %c0_i32_0 : i32, i32, i32
  }
}

module attributes {stable_mosaic.version = 11 : i64} {
  func.func @kernel(%arg0: i32, %arg1: memref<1x8x256xf32, #tpu.memory_space<vmem>>, %arg2: memref<1x16x256xf32, #tpu.memory_space<vmem>>, %arg3: memref<1x8x256xf32, #tpu.memory_space<vmem>>, %arg4: memref<1x8x256xf32, #tpu.memory_space<vmem>>, %arg5: memref<40x2xf32, #tpu.memory_space<vmem>>, %arg6: memref<2x40xf32, #tpu.memory_space<vmem>>, %arg7: memref<1x40x256xf32, #tpu.memory_space<vmem>>) attributes {dimension_semantics = [#tpu.dimension_semantics<parallel>], iteration_bounds = array<i64: 2>, scalar_prefetch = 0 : i64, scratch_operands = 0 : i64, tpu.core_type = #tpu.core_type<tc>, window_params = [{transform_indices = @transform_0, window_bounds = array<i64: 1, 8, 256>}, {transform_indices = @transform_1, window_bounds = array<i64: 1, 16, 256>}, {transform_indices = @transform_2, window_bounds = array<i64: 1, 8, 256>}, {transform_indices = @transform_3, window_bounds = array<i64: 1, 8, 256>}, {pipeline_mode = #tpu.pipeline_mode<synchronous>, transform_indices = @transform_4, window_bounds = array<i64: 40, 2>}, {pipeline_mode = #tpu.pipeline_mode<synchronous>, transform_indices = @transform_5, window_bounds = array<i64: 2, 40>}, {transform_indices = @transform_6, window_bounds = array<i64: 1, 40, 256>}]} {
    %c0 = arith.constant 0 : index
    %c0_0 = arith.constant 0 : index
    %c0_1 = arith.constant 0 : index
    %0 = vector.load %arg1[%c0, %c0_0, %c0_1] : memref<1x8x256xf32, #tpu.memory_space<vmem>>, vector<1x8x256xf32>
    %c0_2 = arith.constant 0 : index
    %c0_3 = arith.constant 0 : index
    %c0_4 = arith.constant 0 : index
    %1 = vector.load %arg2[%c0_2, %c0_3, %c0_4] : memref<1x16x256xf32, #tpu.memory_space<vmem>>, vector<1x16x256xf32>
    %c0_5 = arith.constant 0 : index
    %c0_6 = arith.constant 0 : index
    %c0_7 = arith.constant 0 : index
    %2 = vector.load %arg3[%c0_5, %c0_6, %c0_7] : memref<1x8x256xf32, #tpu.memory_space<vmem>>, vector<1x8x256xf32>
    %c0_8 = arith.constant 0 : index
    %c0_9 = arith.constant 0 : index
    %c0_10 = arith.constant 0 : index
    %3 = vector.load %arg4[%c0_8, %c0_9, %c0_10] : memref<1x8x256xf32, #tpu.memory_space<vmem>>, vector<1x8x256xf32>
    %4 = tpu.concatenate %0, %1, %2, %3 in 1 : vector<1x8x256xf32>, vector<1x16x256xf32>, vector<1x8x256xf32>, vector<1x8x256xf32> -> vector<1x40x256xf32>
    %cst = arith.constant dense<0.000000e+00> : vector<1x40xf32>
    %5 = vector.multi_reduction <add>, %4, %cst [2] : vector<1x40x256xf32> to vector<1x40xf32>
    %cst_11 = arith.constant 3.906250e-03 : f32
    %6 = vector.broadcast %cst_11 : f32 to vector<1x40xf32>
    %7 = arith.mulf %5, %6 : vector<1x40xf32>
    %c0_12 = arith.constant 0 : index
    %c0_13 = arith.constant 0 : index
    %8 = vector.load %arg5[%c0_12, %c0_13] : memref<40x2xf32, #tpu.memory_space<vmem>>, vector<40x2xf32>
    %cst_14 = arith.constant dense<0.000000e+00> : vector<1x2xf32>
    %9 = tpu.matmul %7, %8, %cst_14 {dimension_numbers = #tpu.dot_dimension_numbers<[1], [0], [0], [1], [0, 0, 1, 1], [], []>} : vector<1x40xf32>, vector<40x2xf32>, vector<1x2xf32> -> vector<1x2xf32>
    %cst_15 = arith.constant 0.000000e+00 : f32
    %10 = vector.broadcast %cst_15 : f32 to vector<1x2xf32>
    %11 = arith.maximumf %9, %10 : vector<1x2xf32>
    %c0_16 = arith.constant 0 : index
    %c0_17 = arith.constant 0 : index
    %12 = vector.load %arg6[%c0_16, %c0_17] : memref<2x40xf32, #tpu.memory_space<vmem>>, vector<2x40xf32>
    %cst_18 = arith.constant dense<0.000000e+00> : vector<1x40xf32>
    %13 = tpu.matmul %11, %12, %cst_18 {dimension_numbers = #tpu.dot_dimension_numbers<[1], [0], [0], [1], [0, 0, 1, 1], [], []>} : vector<1x2xf32>, vector<2x40xf32>, vector<1x40xf32> -> vector<1x40xf32>
    %14 = arith.negf %13 : vector<1x40xf32>
    %15 = math.exp %14 : vector<1x40xf32>
    %cst_19 = arith.constant 1.000000e+00 : f32
    %16 = vector.broadcast %cst_19 : f32 to vector<1x40xf32>
    %17 = arith.addf %16, %15 : vector<1x40xf32>
    %18 = arith.divf %16, %17 : vector<1x40xf32>
    %19 = vector.shape_cast %18 : vector<1x40xf32> to vector<1x40x1xf32>
    %20 = vector.broadcast %19 : vector<1x40x1xf32> to vector<1x40x256xf32>
    %21 = arith.mulf %4, %20 : vector<1x40x256xf32>
    %c0_20 = arith.constant 0 : index
    %c0_21 = arith.constant 0 : index
    %c0_22 = arith.constant 0 : index
    %22 = vector.load %arg7[%c0_20, %c0_21, %c0_22] : memref<1x40x256xf32, #tpu.memory_space<vmem>>, vector<1x40x256xf32>
    tpu.vector_store %arg7[%c0_20, %c0_21, %c0_22], %21 {strides = array<i32>} : memref<1x40x256xf32, #tpu.memory_space<vmem>>, vector<1x40x256xf32>,
    return
  }
  func.func @transform_0(%arg0: i32) -> (i32, i32, i32) {
    %c0_i32 = arith.constant 0 : i32
    %c0_i32_0 = arith.constant 0 : i32
    %c0_i32_1 = arith.constant 0 : i32
    return %arg0, %c0_i32, %c0_i32_0 : i32, i32, i32
  }
  func.func @transform_1(%arg0: i32) -> (i32, i32, i32) {
    %c0_i32 = arith.constant 0 : i32
    %c0_i32_0 = arith.constant 0 : i32
    %c0_i32_1 = arith.constant 0 : i32
    return %arg0, %c0_i32, %c0_i32_0 : i32, i32, i32
  }
  func.func @transform_2(%arg0: i32) -> (i32, i32, i32) {
    %c0_i32 = arith.constant 0 : i32
    %c0_i32_0 = arith.constant 0 : i32
    %c0_i32_1 = arith.constant 0 : i32
    return %arg0, %c0_i32, %c0_i32_0 : i32, i32, i32
  }
  func.func @transform_3(%arg0: i32) -> (i32, i32, i32) {
    %c0_i32 = arith.constant 0 : i32
    %c0_i32_0 = arith.constant 0 : i32
    %c0_i32_1 = arith.constant 0 : i32
    return %arg0, %c0_i32, %c0_i32_0 : i32, i32, i32
  }
  func.func @transform_4(%arg0: i32) -> (i32, i32) {
    %c0_i32 = arith.constant 0 : i32
    %c0_i32_0 = arith.constant 0 : i32
    %c0_i32_1 = arith.constant 0 : i32
    return %c0_i32, %c0_i32_0 : i32, i32
  }
  func.func @transform_5(%arg0: i32) -> (i32, i32) {
    %c0_i32 = arith.constant 0 : i32
    %c0_i32_0 = arith.constant 0 : i32
    %c0_i32_1 = arith.constant 0 : i32
    return %c0_i32, %c0_i32_0 : i32, i32
  }
  func.func @transform_6(%arg0: i32) -> (i32, i32, i32) {
    %c0_i32 = arith.constant 0 : i32
    %c0_i32_0 = arith.constant 0 : i32
    %c0_i32_1 = arith.constant 0 : i32
    return %arg0, %c0_i32, %c0_i32_0 : i32, i32, i32
  }
}

</mosaic_0001>

<bundles_post_ra>
// kernel: inception_forward.6
= control target key start
LH: loop header
LB: loop body
LE: loop exit
PB: predicated region body
PF: predicated region fallthrough
CT: control target
= control target key end

     0   :  { %s481_s15 = smov 0   ;;  %s529_s0 = inlined_call_operand.vmem [shape: f32[2,16,256], index: 0, kind: input, shape index: {}]   ;;  %s530_s1 = inlined_call_operand.vmem [shape: f32[24,16], index: 1, kind: input, shape index: {}]   ;;  %s531_s2 = inlined_call_operand.vmem [shape: f32[24,1], index: 2, kind: input, shape index: {}]   ;;  %s532_s3 = inlined_call_operand.vmem [shape: f32[24,1], index: 3, kind: input, shape index: {}]   ;;  %s533_s4 = inlined_call_operand.vmem [shape: f32[2,24,256], index: 4, kind: output, shape index: {}]  }
   0x1 LB: > { %s413_s16 = sadd.s32 4294967295, %s452_s15   ;;  %p417_p0 = scmp.ge.s32.totalorder %s452_s15, 1  ;;  %s452_s15 = sphi %s481_s15, %s14_s15  }
   0x2   : > { %p162_p1 = scmp.lt.s32.totalorder %s452_s15, 3 }
   0x4   : > { %p163_p2 = pnand %p417_p0, %p162_p1 }
   0x5   : > { %p188_p3 = scmp.lt.s32.totalorder (!%p163_p2), %s413_s16, 1  ;;  %v454_v0 = vmov (!%p163_p2), 0.0   ;;  %v300_v1 = vld [vmem:[%s531_s2 + $0x10] sm:$0xff] (!%p163_p2)  ;;  %v298_v2 = vld [vmem:[%s531_s2] sm:$0xff] (!%p163_p2)  ;;  %v455_v3 = vmov (!%p163_p2), 0   ;;  %v299_v5 = vld [vmem:[%s531_s2 + $0x8] sm:$0xff] (!%p163_p2) }
   0x6   : > { %166 = sbr.rel (%p163_p2) target bundleno = 247 (0xf7), region = 36  ;;  %279 = vmatprep.mubr.f32.mxu0 (!%p163_p2), %v454_v0  ;;  %285 = vmatprep.mubr.f32.mxu1 (!%p163_p2), %v454_v0  ;;  %v322_v4 = vld [vmem:[%s532_s3] sm:$0xff] (!%p163_p2)  ;;  %v324_v12 = vld [vmem:[%s532_s3 + $0x10] sm:$0xff] (!%p163_p2)  ;;  %v323_v13 = vld [vmem:[%s532_s3 + $0x8] sm:$0xff] (!%p163_p2)  ;;  %vm205_vm0 = vcmask (!%p163_p2), 130048  }
   0x7   : > { %445 = vset.pattern.permute.xlu1 (!%p163_p2), %v455_v3  ;;  %444 = vset.pattern.permute.xlu0 (!%p163_p2), %v455_v3  ;;  %v202_v14 = vld [vmem:[%s530_s1] sm:$0xff] (!%p163_p2)  ;;  %v203_v15 = vld [vmem:[%s530_s1 + $0x8] sm:$0xff] (!%p163_p2)  ;;  %v204_v16 = vld [vmem:[%s530_s1 + $0x10] sm:$0xff] (!%p163_p2) }
   0x8   : > { %313 = vperm.xlu1 (!%p163_p2), %445, %v300_v1   ;;  %303 = vperm.xlu0 (!%p163_p2), %444, %v298_v2  }
   0xc   : > { %327 = vperm.xlu1 (!%p163_p2), %445, %v322_v4   ;;  %308 = vperm.xlu0 (!%p163_p2), %444, %v299_v5  }
   0xd   : > { %s535_s16 = smov (!%p188_p3, %s413_s16), 1 }
   0xe   : > { %s426_s21 = sshll.u32 %s535_s16, 5  ;;  %s433_s13 = smul.u32 48, %s535_s16 }
   0xf   : > { %s192_s28 = scalar_lea.vmem %s529_s0, %s426_s21 }
  0x10   : > { %v199_v6 = vld [vmem:[%s192_s28 + $0x8] sm:$0xff]  ;;  %v201_v7 = vld [vmem:[%s192_s28 + $0x18] sm:$0xff]  ;;  %v198_v8 = vld [vmem:[%s192_s28] sm:$0xff]  ;;  %337 = vperm.xlu1 %445, %v324_v12   ;;  %332 = vperm.xlu0 %444, %v323_v13   ;;  %s197_s18 = scalar_lea.vmem %s533_s4, %s433_s13 }
  0x11   : > { %v427_v9 = vpack.c.bf16 %v201_v7, %v199_v6  ;;  %v200_v10 = vld [vmem:[%s192_s28 + $0x10] sm:$0xff] }
  0x12   : > { %v429_v11 = vpack.c.bf16 %v200_v10, %v198_v8 }
  0x13   : > { %428 = vmatprep.subr.bf16.mxu0 %v427_v9  ;;  %431 = vmatprep.subr.bf16.mxu1 %v427_v9 }
  0x14   : > { %430 = vmatpush1.bf16.msra.mxu0 %v429_v11  ;;  %432 = vmatpush1.bf16.msra.mxu1 %v429_v11 }
  0x17   : > { %421 = vmatmul.mubr.msk.f32.vlgmr.msra.gmra.mrb[0].mxu0 %vm205_vm0, %v202_v14  ;;  %422 = vmatmul.mubr.msk.f32.vlgmr.msra.gmra.mrb[0].mxu1 %vm205_vm0, %v203_v15 }
  0x18   : > { %291 = vmatprep.mubr.f32.mxu1 %v454_v0 }
  0x1b   : > { %423 = vmatmul.mubr.msk.f32.gmra.mrb[2].mxu1 %vm205_vm0, %v204_v16 }
  0x87   : > { %v304_v17 = vpop.permute.xlu0 %303  ;;  %v314_v18 = vpop.permute.xlu1 %313 }
  0x8b   : > { %v309_v19 = vpop.permute.xlu0 %308  ;;  %v328_v20 = vpop.permute.xlu1 %327 }
  0x8f   : > { %v333_v27 = vpop.permute.xlu0 %332  ;;  %v338_v39 = vpop.permute.xlu1 %337 }
  0xea   : > { %v281_v21 = vpop.f32.mrb[0].mxu0  ;;  %v287_v22 = vpop.f32.mrb[0].mxu1 }
  0xeb   : > { %v316_v23 = vmul.f32 %v304_v17, %v281_v21  ;;  %v318_v24 = vmul.f32 %v309_v19, %v287_v22  ;;  %v283_v25 = vpop.f32.mrb[1].mxu0  ;;  %v289_v26 = vpop.f32.mrb[1].mxu1 }
  0xec   : > { %v317_v28 = vmul.f32 %v304_v17, %v283_v25  ;;  %v319_v29 = vmul.f32 %v309_v19, %v289_v26 }
  0xed   : > { %v340_v30 = vadd.f32 %v328_v20, %v316_v23  ;;  %v342_v31 = vadd.f32 %v333_v27, %v318_v24 }
  0xee   : > { %v341_v32 = vadd.f32 %v328_v20, %v317_v28  ;;  %v343_v33 = vadd.f32 %v333_v27, %v319_v29  ;;  %v293_v34 = vpop.f32.mrb[2].mxu1 }
  0xef   : > { %v346_v35 = vmax.f32 %v340_v30, 0.0  ;;  %v348_v36 = vmax.f32 %v342_v31, 0.0  ;;  %v320_v37 = vmul.f32 %v314_v18, %v293_v34  ;;  %v295_v38 = vpop.f32.mrb[3].mxu1 }
  0xf0   : > { %v347_v40 = vmax.f32 %v341_v32, 0.0  ;;  %v349_v41 = vmax.f32 %v343_v33, 0.0  ;;  %v321_v42 = vmul.f32 %v314_v18, %v295_v38 }
  0xf1   : > { %352 = vst [vmem:[%s197_s18] sm:$0xff] %v346_v35  ;;  %354 = vst [vmem:[%s197_s18 + $0x10] sm:$0xff] %v348_v36  ;;  %v344_v43 = vadd.f32 %v338_v39, %v320_v37 }
  0xf2   : > { %353 = vst [vmem:[%s197_s18 + $0x8] sm:$0xff] %v347_v40  ;;  %355 = vst [vmem:[%s197_s18 + $0x18] sm:$0xff] %v349_v41  ;;  %v345_v44 = vadd.f32 %v338_v39, %v321_v42 }
  0xf3   : > { %v350_v45 = vmax.f32 %v344_v43, 0.0 }
  0xf4   : > { %v351_v46 = vmax.f32 %v345_v44, 0.0 }
  0xf5   : > { %356 = vst [vmem:[%s197_s18 + $0x20] sm:$0xff] %v350_v45 }
  0xf6   : > { %357 = vst [vmem:[%s197_s18 + $0x28] sm:$0xff] %v351_v46 }
  0xf7 PF: > { %s14_s15 = sadd.s32 1, %s452_s15  }
  0xf8   : > { %p11_p4 = scmp.ge.s32.totalorder %s14_s15, 4  }
  0xfa   :  { %13 = sbr.rel (!%p11_p4) target bundleno = 1 (0x1), region = 66 }

// kernel: inception_forward.8
= control target key start
LH: loop header
LB: loop body
LE: loop exit
PB: predicated region body
PF: predicated region fallthrough
CT: control target
= control target key end

     0   :  { %s442_s15 = smov 0   ;;  %s492_s0 = inlined_call_operand.vmem [shape: f32[2,72,256], index: 0, kind: input, shape index: {}]   ;;  %s493_s1 = inlined_call_operand.vmem [shape: f32[8,72], index: 1, kind: input, shape index: {}]   ;;  %s494_s2 = inlined_call_operand.vmem [shape: f32[8,1], index: 2, kind: input, shape index: {}]   ;;  %s495_s3 = inlined_call_operand.vmem [shape: f32[8,1], index: 3, kind: input, shape index: {}]   ;;  %s496_s4 = inlined_call_operand.vmem [shape: f32[2,8,256], index: 4, kind: output, shape index: {}]  }
   0x1 LB: > { %s367_s16 = sadd.s32 4294967295, %s413_s15   ;;  %p371_p0 = scmp.ge.s32.totalorder %s413_s15, 1  ;;  %s413_s15 = sphi %s442_s15, %s14_s15  }
   0x2   : > { %p162_p1 = scmp.lt.s32.totalorder %s413_s15, 3 }
   0x4   : > { %p163_p2 = pnand %p371_p0, %p162_p1 }
   0x5   : > { %p188_p3 = scmp.lt.s32.totalorder (!%p163_p2), %s367_s16, 1  ;;  %v292_v0 = vld [vmem:[%s494_s2] sm:$0xff] (!%p163_p2)  ;;  %v415_v1 = vmov (!%p163_p2), 0.0   ;;  %v416_v2 = vmov (!%p163_p2), 0   ;;  %vm217_vm0 = vcmask (!%p163_p2), 588800  }
   0x6   : > { %166 = sbr.rel (%p163_p2) target bundleno = 258 (0x102), region = 36  ;;  %285 = vmatprep.mubr.f32.mxu0 (!%p163_p2), %v415_v1  ;;  %406 = vset.pattern.permute.xlu0 (!%p163_p2), %v416_v2  ;;  %v300_v3 = vld [vmem:[%s495_s3] sm:$0xff] (!%p163_p2) }
   0x7   : > { %295 = vperm.xlu0 (!%p163_p2), %406, %v292_v0   ;;  %v216_v30 = vld [vmem:[%s493_s1] sm:$0xff] (!%p163_p2) }
   0xb   : > { %303 = vperm.xlu0 (!%p163_p2), %406, %v300_v3  }
   0xd   : > { %s498_s16 = smov (!%p188_p3, %s367_s16), 1 }
   0xe   : > { %s395_s21 = smul.u32 144, %s498_s16  ;;  %s378_s27 = sshll.u32 %s498_s16, 4 }
   0xf   : > { %s197_s30 = scalar_lea.vmem %s496_s4, %s378_s27 }
  0x10   : > { %s462_s24 = scalar_lea.vmem %s492_s0, %s395_s21 }
  0x11   : > { %v199_v4 = vld [vmem:[%s462_s24 + $0x8] sm:$0xff]  ;;  %v201_v5 = vld [vmem:[%s462_s24 + $0x18] sm:$0xff]  ;;  %v198_v6 = vld [vmem:[%s462_s24] sm:$0xff] }
  0x12   : > { %v379_v7 = vpack.c.bf16 %v201_v5, %v199_v4  ;;  %v200_v8 = vld [vmem:[%s462_s24 + $0x10] sm:$0xff]  ;;  %v203_v9 = vld [vmem:[%s462_s24 + $0x28] sm:$0xff]  ;;  %v205_v10 = vld [vmem:[%s462_s24 + $0x38] sm:$0xff] }
  0x13   : > { %v381_v11 = vpack.c.bf16 %v200_v8, %v198_v6  ;;  %v383_v12 = vpack.c.bf16 %v205_v10, %v203_v9  ;;  %v202_v13 = vld [vmem:[%s462_s24 + $0x20] sm:$0xff]  ;;  %v204_v14 = vld [vmem:[%s462_s24 + $0x30] sm:$0xff]  ;;  %v207_v15 = vld [vmem:[%s462_s24 + $0x48] sm:$0xff] }
  0x14   : > { %380 = vmatprep.subr.bf16.mxu0 %v379_v7  ;;  %v209_v16 = vld [vmem:[%s462_s24 + $0x58] sm:$0xff]  ;;  %v385_v17 = vpack.c.bf16 %v204_v14, %v202_v13  ;;  %v206_v19 = vld [vmem:[%s462_s24 + $0x40] sm:$0xff]  ;;  %v208_v20 = vld [vmem:[%s462_s24 + $0x50] sm:$0xff] }
  0x15   : > { %382 = vmatpush1.bf16.msra.mxu0 %v381_v11  ;;  %v387_v18 = vpack.c.bf16 %v209_v16, %v207_v15  ;;  %v211_v21 = vld [vmem:[%s462_s24 + $0x68] sm:$0xff]  ;;  %v213_v22 = vld [vmem:[%s462_s24 + $0x78] sm:$0xff]  ;;  %v389_v23 = vpack.c.bf16 %v208_v20, %v206_v19  ;;  %v210_v25 = vld [vmem:[%s462_s24 + $0x60] sm:$0xff] }
  0x16   : > { %384 = vmatprep.subr.bf16.mxu0 %v383_v12  ;;  %v391_v24 = vpack.c.bf16 %v213_v22, %v211_v21  ;;  %v212_v26 = vld [vmem:[%s462_s24 + $0x70] sm:$0xff]  ;;  %v215_v28 = vld [vmem:[%s462_s24 + $0x88] sm:$0xff]  ;;  %v214_v29 = vld [vmem:[%s462_s24 + $0x80] sm:$0xff] }
  0x17   : > { %v393_v27 = vpack.c.bf16 %v212_v26, %v210_v25 }
  0x19   : > { %386 = vmatpush1.bf16.msra.mxu0 %v385_v17 }
  0x1a   : > { %388 = vmatprep.subr.bf16.mxu0 %v387_v18 }
  0x1d   : > { %390 = vmatpush1.bf16.msra.mxu0 %v389_v23 }
  0x1e   : > { %392 = vmatprep.subr.bf16.mxu0 %v391_v24 }
  0x21   : > { %394 = vmatpush1.bf16.msra.mxu0 %v393_v27 }
  0x22   : > { %237 = vmatprep.subr.mxu0 %v215_v28 }
  0x25   : > { %238 = vmatpush1.msra.mxu0 %v214_v29 }
  0x26   : > { %375 = vmatmul.mubr.msk.f32.vlgmr.msra.gmra.mrb[0].mxu0 %vm217_vm0, %v216_v30 }
  0x86   : > { %v296_v31 = vpop.permute.xlu0 %295 }
  0x8a   : > { %v304_v35 = vpop.permute.xlu0 %303 }
  0xf9   : > { %v287_v32 = vpop.f32.mrb[0].mxu0 }
  0xfa   : > { %v298_v33 = vmul.f32 %v296_v31, %v287_v32  ;;  %v289_v34 = vpop.f32.mrb[1].mxu0 }
  0xfb   : > { %v299_v36 = vmul.f32 %v296_v31, %v289_v34 }
  0xfc   : > { %v306_v37 = vadd.f32 %v304_v35, %v298_v33 }
  0xfd   : > { %v307_v38 = vadd.f32 %v304_v35, %v299_v36 }
  0xfe   : > { %v308_v39 = vmax.f32 %v306_v37, 0.0 }
  0xff   : > { %v309_v40 = vmax.f32 %v307_v38, 0.0 }
 0x100   : > { %310 = vst [vmem:[%s197_s30] sm:$0xff] %v308_v39 }
 0x101   : > { %311 = vst [vmem:[%s197_s30 + $0x8] sm:$0xff] %v309_v40 }
 0x102 PF: > { %s14_s15 = sadd.s32 1, %s413_s15  }
 0x103   : > { %p11_p4 = scmp.ge.s32.totalorder %s14_s15, 4  }
 0x105   :  { %13 = sbr.rel (!%p11_p4) target bundleno = 1 (0x1), region = 66 }

// kernel: inception_forward.7
= control target key start
LH: loop header
LB: loop body
LE: loop exit
PB: predicated region body
PF: predicated region fallthrough
CT: control target
= control target key end

     0   :  { %s484_s15 = smov 0   ;;  %s543_s0 = inlined_call_operand.vmem [shape: f32[2,72,256], index: 0, kind: input, shape index: {}]   ;;  %s544_s1 = inlined_call_operand.vmem [shape: f32[16,72], index: 1, kind: input, shape index: {}]   ;;  %s545_s2 = inlined_call_operand.vmem [shape: f32[16,1], index: 2, kind: input, shape index: {}]   ;;  %s546_s3 = inlined_call_operand.vmem [shape: f32[16,1], index: 3, kind: input, shape index: {}]   ;;  %s547_s4 = inlined_call_operand.vmem [shape: f32[2,16,256], index: 4, kind: output, shape index: {}]  }
   0x1 LB: > { %s397_s16 = sadd.s32 4294967295, %s455_s15   ;;  %p401_p0 = scmp.ge.s32.totalorder %s455_s15, 1  ;;  %s455_s15 = sphi %s484_s15, %s14_s15  }
   0x2   : > { %p162_p1 = scmp.lt.s32.totalorder %s455_s15, 3 }
   0x4   : > { %p163_p2 = pnand %p401_p0, %p162_p1 }
   0x5   : > { %p188_p3 = scmp.lt.s32.totalorder (!%p163_p2), %s397_s16, 1  ;;  %v457_v0 = vmov (!%p163_p2), 0.0   ;;  %v302_v1 = vld [vmem:[%s545_s2] sm:$0xff] (!%p163_p2)  ;;  %v458_v3 = vmov (!%p163_p2), 0   ;;  %v303_v4 = vld [vmem:[%s545_s2 + $0x8] sm:$0xff] (!%p163_p2)  ;;  %vm218_vm0 = vcmask (!%p163_p2), 588800  }
   0x6   : > { %166 = sbr.rel (%p163_p2) target bundleno = 258 (0x102), region = 36  ;;  %289 = vmatprep.mubr.f32.mxu0 (!%p163_p2), %v457_v0  ;;  %295 = vmatprep.mubr.f32.mxu1 (!%p163_p2), %v457_v0  ;;  %v318_v2 = vld [vmem:[%s546_s3] sm:$0xff] (!%p163_p2)  ;;  %v319_v5 = vld [vmem:[%s546_s3 + $0x8] sm:$0xff] (!%p163_p2) }
   0x7   : > { %447 = vset.pattern.permute.xlu0 (!%p163_p2), %v458_v3  ;;  %448 = vset.pattern.permute.xlu1 (!%p163_p2), %v458_v3  ;;  %v216_v32 = vld [vmem:[%s544_s1] sm:$0xff] (!%p163_p2)  ;;  %v217_v33 = vld [vmem:[%s544_s1 + $0x8] sm:$0xff] (!%p163_p2) }
   0x8   : > { %306 = vperm.xlu0 (!%p163_p2), %447, %v302_v1   ;;  %322 = vperm.xlu1 (!%p163_p2), %448, %v318_v2  }
   0xc   : > { %311 = vperm.xlu0 (!%p163_p2), %447, %v303_v4   ;;  %327 = vperm.xlu1 (!%p163_p2), %448, %v319_v5  }
   0xd   : > { %s549_s16 = smov (!%p188_p3, %s397_s16), 1 }
   0xe   : > { %s436_s21 = smul.u32 144, %s549_s16  ;;  %s409_s7 = sshll.u32 %s549_s16, 5 }
   0xf   : > { %s197_s10 = scalar_lea.vmem %s547_s4, %s409_s7 }
  0x10   : > { %s510_s28 = scalar_lea.vmem %s543_s0, %s436_s21 }
  0x11   : > { %v199_v6 = vld [vmem:[%s510_s28 + $0x8] sm:$0xff]  ;;  %v201_v7 = vld [vmem:[%s510_s28 + $0x18] sm:$0xff]  ;;  %v198_v8 = vld [vmem:[%s510_s28] sm:$0xff] }
  0x12   : > { %v410_v9 = vpack.c.bf16 %v201_v7, %v199_v6  ;;  %v200_v10 = vld [vmem:[%s510_s28 + $0x10] sm:$0xff]  ;;  %v203_v11 = vld [vmem:[%s510_s28 + $0x28] sm:$0xff]  ;;  %v205_v12 = vld [vmem:[%s510_s28 + $0x38] sm:$0xff] }
  0x13   : > { %v412_v13 = vpack.c.bf16 %v200_v10, %v198_v8  ;;  %v414_v14 = vpack.c.bf16 %v205_v12, %v203_v11  ;;  %v202_v15 = vld [vmem:[%s510_s28 + $0x20] sm:$0xff]  ;;  %v204_v16 = vld [vmem:[%s510_s28 + $0x30] sm:$0xff]  ;;  %v207_v17 = vld [vmem:[%s510_s28 + $0x48] sm:$0xff] }
  0x14   : > { %411 = vmatprep.subr.bf16.mxu0 %v410_v9  ;;  %426 = vmatprep.subr.bf16.mxu1 %v410_v9  ;;  %v209_v18 = vld [vmem:[%s510_s28 + $0x58] sm:$0xff]  ;;  %v416_v19 = vpack.c.bf16 %v204_v16, %v202_v15  ;;  %v206_v21 = vld [vmem:[%s510_s28 + $0x40] sm:$0xff]  ;;  %v208_v22 = vld [vmem:[%s510_s28 + $0x50] sm:$0xff] }
  0x15   : > { %413 = vmatpush1.bf16.msra.mxu0 %v412_v13  ;;  %431 = vmatpush1.bf16.msra.mxu1 %v412_v13  ;;  %v418_v20 = vpack.c.bf16 %v209_v18, %v207_v17  ;;  %v211_v23 = vld [vmem:[%s510_s28 + $0x68] sm:$0xff]  ;;  %v213_v24 = vld [vmem:[%s510_s28 + $0x78] sm:$0xff]  ;;  %v420_v25 = vpack.c.bf16 %v208_v22, %v206_v21  ;;  %v210_v27 = vld [vmem:[%s510_s28 + $0x60] sm:$0xff] }
  0x16   : > { %415 = vmatprep.subr.bf16.mxu0 %v414_v14  ;;  %427 = vmatprep.subr.bf16.mxu1 %v414_v14  ;;  %v422_v26 = vpack.c.bf16 %v213_v24, %v211_v23  ;;  %v212_v28 = vld [vmem:[%s510_s28 + $0x70] sm:$0xff]  ;;  %v215_v30 = vld [vmem:[%s510_s28 + $0x88] sm:$0xff]  ;;  %v214_v31 = vld [vmem:[%s510_s28 + $0x80] sm:$0xff] }
  0x17   : > { %v424_v29 = vpack.c.bf16 %v212_v28, %v210_v27 }
  0x19   : > { %417 = vmatpush1.bf16.msra.mxu0 %v416_v19  ;;  %432 = vmatpush1.bf16.msra.mxu1 %v416_v19 }
  0x1a   : > { %419 = vmatprep.subr.bf16.mxu0 %v418_v20  ;;  %428 = vmatprep.subr.bf16.mxu1 %v418_v20 }
  0x1d   : > { %421 = vmatpush1.bf16.msra.mxu0 %v420_v25  ;;  %433 = vmatpush1.bf16.msra.mxu1 %v420_v25 }
  0x1e   : > { %423 = vmatprep.subr.bf16.mxu0 %v422_v26  ;;  %429 = vmatprep.subr.bf16.mxu1 %v422_v26 }
  0x21   : > { %425 = vmatpush1.bf16.msra.mxu0 %v424_v29  ;;  %434 = vmatpush1.bf16.msra.mxu1 %v424_v29 }
  0x22   : > { %241 = vmatprep.subr.mxu0 %v215_v30  ;;  %430 = vmatprep.subr.mxu1 %v215_v30 }
  0x25   : > { %242 = vmatpush1.msra.mxu0 %v214_v31  ;;  %435 = vmatpush1.msra.mxu1 %v214_v31 }
  0x26   : > { %405 = vmatmul.mubr.msk.f32.vlgmr.msra.gmra.mrb[0].mxu0 %vm218_vm0, %v216_v32  ;;  %406 = vmatmul.mubr.msk.f32.vlgmr.msra.gmra.mrb[0].mxu1 %vm218_vm0, %v217_v33 }
  0x87   : > { %v307_v34 = vpop.permute.xlu0 %306  ;;  %v323_v35 = vpop.permute.xlu1 %322 }
  0x8b   : > { %v312_v36 = vpop.permute.xlu0 %311  ;;  %v328_v43 = vpop.permute.xlu1 %327 }
  0xf9   : > { %v291_v37 = vpop.f32.mrb[0].mxu0  ;;  %v297_v38 = vpop.f32.mrb[0].mxu1 }
  0xfa   : > { %v314_v39 = vmul.f32 %v307_v34, %v291_v37  ;;  %v316_v40 = vmul.f32 %v312_v36, %v297_v38  ;;  %v293_v41 = vpop.f32.mrb[1].mxu0  ;;  %v299_v42 = vpop.f32.mrb[1].mxu1 }
  0xfb   : > { %v315_v44 = vmul.f32 %v307_v34, %v293_v41  ;;  %v317_v45 = vmul.f32 %v312_v36, %v299_v42 }
  0xfc   : > { %v330_v46 = vadd.f32 %v323_v35, %v314_v39  ;;  %v332_v47 = vadd.f32 %v328_v43, %v316_v40 }
  0xfd   : > { %v331_v48 = vadd.f32 %v323_v35, %v315_v44  ;;  %v333_v49 = vadd.f32 %v328_v43, %v317_v45 }
  0xfe   : > { %v334_v50 = vmax.f32 %v330_v46, 0.0  ;;  %v336_v51 = vmax.f32 %v332_v47, 0.0 }
  0xff   : > { %v335_v52 = vmax.f32 %v331_v48, 0.0  ;;  %v337_v53 = vmax.f32 %v333_v49, 0.0 }
 0x100   : > { %338 = vst [vmem:[%s197_s10] sm:$0xff] %v334_v50  ;;  %340 = vst [vmem:[%s197_s10 + $0x10] sm:$0xff] %v336_v51 }
 0x101   : > { %339 = vst [vmem:[%s197_s10 + $0x8] sm:$0xff] %v335_v52  ;;  %341 = vst [vmem:[%s197_s10 + $0x18] sm:$0xff] %v337_v53 }
 0x102 PF: > { %s14_s15 = sadd.s32 1, %s455_s15  }
 0x103   : > { %p11_p4 = scmp.ge.s32.totalorder %s14_s15, 4  }
 0x105   :  { %13 = sbr.rel (!%p11_p4) target bundleno = 1 (0x1), region = 66 }

// kernel: inception_forward.10
= control target key start
LH: loop header
LB: loop body
LE: loop exit
PB: predicated region body
PF: predicated region fallthrough
CT: control target
= control target key end

     0   :  { %s480_s15 = smov 0   ;;  %s548_s0 = inlined_call_operand.vmem [shape: f32[2,144,256], index: 0, kind: input, shape index: {}]   ;;  %s549_s1 = inlined_call_operand.vmem [shape: f32[8,16], index: 1, kind: input, shape index: {}]   ;;  %s550_s2 = inlined_call_operand.vmem [shape: f32[8,1], index: 2, kind: input, shape index: {}]   ;;  %s551_s3 = inlined_call_operand.vmem [shape: f32[8,1], index: 3, kind: input, shape index: {}]   ;;  %s552_s4 = inlined_call_operand.vmem [shape: f32[2,8,256], index: 4, kind: output, shape index: {}]  }
   0x1 LB: > { %s417_s16 = sadd.s32 4294967295, %s451_s15   ;;  %p421_p0 = scmp.ge.s32.totalorder %s451_s15, 1  ;;  %s451_s15 = sphi %s480_s15, %s14_s15  }
   0x2   : > { %p162_p1 = scmp.lt.s32.totalorder %s451_s15, 3 }
   0x4   : > { %p163_p2 = pnand %p421_p0, %p162_p1 }
   0x5   : > { %p188_p3 = scmp.lt.s32.totalorder (!%p163_p2), %s417_s16, 1  ;;  %v342_v0 = vld [vmem:[%s550_s2] sm:$0xff] (!%p163_p2)  ;;  %v453_v1 = vmov (!%p163_p2), 0.0   ;;  %v454_v2 = vmov (!%p163_p2), 0   ;;  %vm267_vm0 = vcmask (!%p163_p2), 130048  }
   0x6   : > { %166 = sbr.rel (%p163_p2) target bundleno = 262 (0x106), region = 36  ;;  %335 = vmatprep.mubr.f32.mxu0 (!%p163_p2), %v453_v1  ;;  %444 = vset.pattern.permute.xlu0 (!%p163_p2), %v454_v2  ;;  %v350_v3 = vld [vmem:[%s551_s3] sm:$0xff] (!%p163_p2) }
   0x7   : > { %345 = vperm.xlu0 (!%p163_p2), %444, %v342_v0  }
   0xb   : > { %353 = vperm.xlu0 (!%p163_p2), %444, %v350_v3  }
   0xd   : > { %s554_s16 = smov (!%p188_p3, %s417_s16), 1 }
   0xe   : > { %s433_s21 = smul.u32 288, %s554_s16  ;;  %s428_s27 = sshll.u32 %s554_s16, 4 }
   0xf   : > { %s197_s30 = scalar_lea.vmem %s552_s4, %s428_s27 }
  0x10   : > { %s500_s24 = scalar_lea.vmem %s548_s0, %s433_s21 }
  0x11   : > { %v199_v4 = vld [vmem:[%s500_s24 + $0x8] sm:$0xff]  ;;  %v201_v5 = vld [vmem:[%s500_s24 + $0x18] sm:$0xff]  ;;  %v198_v22 = vld [vmem:[%s500_s24] sm:$0xff] }
  0x12   : > { %v203_v6 = vld [vmem:[%s500_s24 + $0x28] sm:$0xff]  ;;  %v205_v7 = vld [vmem:[%s500_s24 + $0x38] sm:$0xff]  ;;  %v200_v23 = vld [vmem:[%s500_s24 + $0x10] sm:$0xff] }
  0x13   : > { %v207_v8 = vld [vmem:[%s500_s24 + $0x48] sm:$0xff]  ;;  %v209_v9 = vld [vmem:[%s500_s24 + $0x58] sm:$0xff]  ;;  %v235_v10 = vmax.f32 %v199_v4, %v203_v6  ;;  %v237_v12 = vmax.f32 %v201_v5, %v205_v7  ;;  %v202_v24 = vld [vmem:[%s500_s24 + $0x20] sm:$0xff] }
  0x14   : > { %v211_v11 = vld [vmem:[%s500_s24 + $0x68] sm:$0xff]  ;;  %v213_v13 = vld [vmem:[%s500_s24 + $0x78] sm:$0xff]  ;;  %v204_v26 = vld [vmem:[%s500_s24 + $0x30] sm:$0xff]  ;;  %v234_v29 = vmax.f32 %v198_v22, %v202_v24 }
  0x15   : > { %v239_v14 = vmax.f32 %v235_v10, %v207_v8  ;;  %v215_v15 = vld [vmem:[%s500_s24 + $0x88] sm:$0xff]  ;;  %v241_v16 = vmax.f32 %v237_v12, %v209_v9  ;;  %v217_v17 = vld [vmem:[%s500_s24 + $0x98] sm:$0xff]  ;;  %v206_v27 = vld [vmem:[%s500_s24 + $0x40] sm:$0xff]  ;;  %v236_v33 = vmax.f32 %v200_v23, %v204_v26 }
  0x16   : > { %v219_v18 = vld [vmem:[%s500_s24 + $0xa8] sm:$0xff]  ;;  %v221_v19 = vld [vmem:[%s500_s24 + $0xb8] sm:$0xff]  ;;  %v208_v28 = vld [vmem:[%s500_s24 + $0x50] sm:$0xff]  ;;  %v238_v37 = vmax.f32 %v234_v29, %v206_v27 }
  0x17   : > { %v243_v20 = vmax.f32 %v239_v14, %v211_v11  ;;  %v245_v21 = vmax.f32 %v241_v16, %v213_v13  ;;  %v223_v30 = vld [vmem:[%s500_s24 + $0xc8] sm:$0xff]  ;;  %v210_v32 = vld [vmem:[%s500_s24 + $0x60] sm:$0xff]  ;;  %v225_v34 = vld [vmem:[%s500_s24 + $0xd8] sm:$0xff]  ;;  %v240_v41 = vmax.f32 %v236_v33, %v208_v28 }
  0x18   : > { %v212_v36 = vld [vmem:[%s500_s24 + $0x70] sm:$0xff]  ;;  %v227_v38 = vld [vmem:[%s500_s24 + $0xe8] sm:$0xff]  ;;  %v214_v40 = vld [vmem:[%s500_s24 + $0x80] sm:$0xff]  ;;  %v242_v45 = vmax.f32 %v238_v37, %v210_v32 }
  0x19   : > { %v247_v25 = vmax.f32 %v243_v20, %v215_v15  ;;  %v249_v31 = vmax.f32 %v245_v21, %v217_v17  ;;  %v229_v42 = vld [vmem:[%s500_s24 + $0xf8] sm:$0xff]  ;;  %v216_v44 = vld [vmem:[%s500_s24 + $0x90] sm:$0xff]  ;;  %v231_v46 = vld [vmem:[%s500_s24 + $0x108] sm:$0xff]  ;;  %v244_v49 = vmax.f32 %v240_v41, %v212_v36 }
  0x1a   : > { %v218_v48 = vld [vmem:[%s500_s24 + $0xa0] sm:$0xff]  ;;  %v233_v50 = vld [vmem:[%s500_s24 + $0x118] sm:$0xff]  ;;  %v220_v52 = vld [vmem:[%s500_s24 + $0xb0] sm:$0xff]  ;;  %v246_v53 = vmax.f32 %v242_v45, %v214_v40 }
  0x1b   : > { %v251_v35 = vmax.f32 %v247_v25, %v219_v18  ;;  %v253_v39 = vmax.f32 %v249_v31, %v221_v19  ;;  %v222_v55 = vld [vmem:[%s500_s24 + $0xc0] sm:$0xff]  ;;  %v248_v56 = vmax.f32 %v244_v49, %v216_v44  ;;  %v224_v58 = vld [vmem:[%s500_s24 + $0xd0] sm:$0xff] }
  0x1c   : > { %v250_v59 = vmax.f32 %v246_v53, %v218_v48  ;;  %v226_v61 = vld [vmem:[%s500_s24 + $0xe0] sm:$0xff]  ;;  %v228_v63 = vld [vmem:[%s500_s24 + $0xf0] sm:$0xff] }
  0x1d   : > { %v255_v43 = vmax.f32 %v251_v35, %v223_v30  ;;  %v257_v47 = vmax.f32 %v253_v39, %v225_v34  ;;  %v252_v62 = vmax.f32 %v248_v56, %v220_v52  ;;  %v230_v2 = vld [vmem:[%s500_s24 + $0x100] sm:$0xff]  ;;  %v232_v4 = vld [vmem:[%s500_s24 + $0x110] sm:$0xff] }
  0x1e   : > { %v254_v0 = vmax.f32 %v250_v59, %v222_v55  ;;  %v266_v10 = vld [vmem:[%s549_s1] sm:$0xff] }
  0x1f   : > { %v259_v51 = vmax.f32 %v255_v43, %v227_v38  ;;  %v261_v54 = vmax.f32 %v257_v47, %v229_v42  ;;  %v256_v3 = vmax.f32 %v252_v62, %v224_v58 }
  0x20   : > { %v258_v5 = vmax.f32 %v254_v0, %v226_v61 }
  0x21   : > { %v263_v57 = vmax.f32 %v259_v51, %v231_v46  ;;  %v265_v60 = vmax.f32 %v261_v54, %v233_v50  ;;  %v260_v6 = vmax.f32 %v256_v3, %v228_v63 }
  0x22   : > { %v262_v7 = vmax.f32 %v258_v5, %v230_v2 }
  0x23   : > { %v429_v1 = vpack.c.bf16 %v265_v60, %v263_v57  ;;  %v264_v8 = vmax.f32 %v260_v6, %v232_v4 }
  0x25   : > { %430 = vmatprep.subr.bf16.mxu0 %v429_v1  ;;  %v431_v9 = vpack.c.bf16 %v264_v8, %v262_v7 }
  0x27   : > { %432 = vmatpush1.bf16.msra.mxu0 %v431_v9 }
  0x2a   : > { %425 = vmatmul.mubr.msk.f32.vlgmr.msra.gmra.mrb[0].mxu0 %vm267_vm0, %v266_v10 }
  0x86   : > { %v346_v11 = vpop.permute.xlu0 %345 }
  0x8a   : > { %v354_v15 = vpop.permute.xlu0 %353 }
  0xfd   : > { %v337_v12 = vpop.f32.mrb[0].mxu0 }
  0xfe   : > { %v348_v13 = vmul.f32 %v346_v11, %v337_v12  ;;  %v339_v14 = vpop.f32.mrb[1].mxu0 }
  0xff   : > { %v349_v16 = vmul.f32 %v346_v11, %v339_v14 }
 0x100   : > { %v356_v17 = vadd.f32 %v354_v15, %v348_v13 }
 0x101   : > { %v357_v18 = vadd.f32 %v354_v15, %v349_v16 }
 0x102   : > { %v358_v19 = vmax.f32 %v356_v17, 0.0 }
 0x103   : > { %v359_v20 = vmax.f32 %v357_v18, 0.0 }
 0x104   : > { %360 = vst [vmem:[%s197_s30] sm:$0xff] %v358_v19 }
 0x105   : > { %361 = vst [vmem:[%s197_s30 + $0x8] sm:$0xff] %v359_v20 }
 0x106 PF: > { %s14_s15 = sadd.s32 1, %s451_s15  }
 0x107   : > { %p11_p4 = scmp.ge.s32.totalorder %s14_s15, 4  }
 0x109   :  { %13 = sbr.rel (!%p11_p4) target bundleno = 1 (0x1), region = 66 }

// kernel: inception_forward.11
= control target key start
LH: loop header
LB: loop body
LE: loop exit
PB: predicated region body
PF: predicated region fallthrough
CT: control target
= control target key end

     0   :  { %s797_s21 = smov 0   ;;  %s886_s0 = inlined_call_operand.vmem [shape: f32[2,8,256], index: 0, kind: input, shape index: {}]   ;;  %s887_s1 = inlined_call_operand.vmem [shape: f32[2,16,256], index: 1, kind: input, shape index: {}]   ;;  %s888_s2 = inlined_call_operand.vmem [shape: f32[2,8,256], index: 2, kind: input, shape index: {}]   ;;  %s889_s3 = inlined_call_operand.vmem [shape: f32[2,8,256], index: 3, kind: input, shape index: {}]   ;;  %s890_s4 = inlined_call_operand.vmem [shape: f32[40,2], index: 4, kind: input, shape index: {}]   ;;  %s891_s5 = inlined_call_operand.vmem [shape: f32[2,40], index: 5, kind: input, shape index: {}]   ;;  %s892_s6 = inlined_call_operand.vmem [shape: f32[2,40,256], index: 6, kind: output, shape index: {}]  }
   0x1 LB: > { %s679_s22 = sadd.s32 4294967295, %s757_s21   ;;  %p683_p0 = scmp.ge.s32.totalorder %s757_s21, 1  ;;  %s757_s21 = sphi %s797_s21, %s16_s21  }
   0x2   : > { %p242_p1 = scmp.lt.s32.totalorder %s757_s21, 3 }
   0x4   : > { %p243_p2 = pnand %p683_p0, %p242_p1 }
   0x5   : > { %p287_p3 = scmp.lt.s32.totalorder (!%p243_p2), %s679_s22, 1  ;;  %v342_v15 = vld [vmem:[%s890_s4] sm:$0xff] (!%p243_p2)  ;;  %v343_v16 = vld [vmem:[%s890_s4 + $0x8] sm:$0xff] (!%p243_p2)  ;;  %v759_v18 = vmov (!%p243_p2), 0.0|0.0   ;;  %v344_v19 = vld [vmem:[%s890_s4 + $0x10] sm:$0xff] (!%p243_p2)  ;;  %v760_v23 = vmov (!%p243_p2), 0.0   ;;  %v352_v24 = vlaneseq (!%p243_p2) }
   0x6   : > { %246 = sbr.rel (%p243_p2) target bundleno = 758 (0x2f6), region = 44  ;;  %v730_v17 = vpack.c.bf16 (!%p243_p2), %v343_v16, %v342_v15  ;;  %729 = vmatprep.subr.bf16.mxu0 (!%p243_p2), %v759_v18  ;;  %v345_v20 = vld [vmem:[%s890_s4 + $0x18] sm:$0xff] (!%p243_p2)  ;;  %v346_v22 = vld [vmem:[%s890_s4 + $0x20] sm:$0xff] (!%p243_p2)  ;;  %vm761_vm0 = vmmov (!%p243_p2), 0   ;;  %724 = vmatprep.subr.mxu1 (!%p243_p2), %v760_v23  ;;  %vm363_vm1 = vcmask (!%p243_p2), 130112   ;;  %vm370_vm2 = vcmask (!%p243_p2), 195712  }
   0x7   : > { %v733_v21 = vpack.c.bf16 (!%p243_p2), %v345_v20, %v344_v19  ;;  %721 = vmatprep.mubr.msk.f32.mxu0 (!%p243_p2), %vm761_vm0, %v760_v23  ;;  %726 = vmatprep.mubr.msk.f32.mxu1 (!%p243_p2), %vm761_vm0, %v760_v23  ;;  %v353_v25 = vand.u32 (!%p243_p2), 127, %v352_v24  ;;  %v355_v26 = vshrl.u32 (!%p243_p2), %v352_v24, 7  ;;  %vm377_vm3 = vcmask (!%p243_p2), 261312   ;;  %v460_v55 = vld [vmem:[%s891_s5] sm:$0x3] (!%p243_p2) }
   0x8   : > { %731 = vmatpush3.bf16.msra.mxu0 (!%p243_p2), %v730_v17  ;;  %vm384_vm4 = vcmask (!%p243_p2), 326912   ;;  %vm386_vm5 = vcmask (!%p243_p2), 326656   ;;  %vm465_vm6 = vcmask (!%p243_p2), 1041408   ;;  %vm461_vm7 = vcmask (!%p243_p2), 15360  }
   0x9   : > { %732 = vmatprep.subr.bf16.mxu0 (!%p243_p2), %v759_v18  ;;  %v358_v27 = vadd.s32 (!%p243_p2), 4294967288, %v353_v25  ;;  %v365_v29 = vadd.s32 (!%p243_p2), 4294967280, %v353_v25  ;;  %v372_v30 = vadd.s32 (!%p243_p2), 4294967272, %v353_v25  ;;  %v356_v32 = vsub.s32 (!%p243_p2), %v353_v25, %v355_v26  ;;  %725 = vmatpush3.msk.msra.mxu1 (!%p243_p2), %vm465_vm6, %v460_v55 }
   0xa   : > { %v379_v35 = vadd.s32 (!%p243_p2), 4294967264, %v353_v25 }
   0xb   : > { %v361_v34 = vsub.s32 (!%p243_p2), %v358_v27, %v355_v26  ;;  %v368_v36 = vsub.s32 (!%p243_p2), %v365_v29, %v355_v26  ;;  %v375_v39 = vsub.s32 (!%p243_p2), %v372_v30, %v355_v26 }
   0xc   : > { %734 = vmatpush3.bf16.msra.mxu0 (!%p243_p2), %v733_v21  ;;  %v382_v45 = vsub.s32 (!%p243_p2), %v379_v35, %v355_v26 }
   0xd   : > { %s894_s22 = smov (!%p287_p3, %s679_s22), 1  ;;  %719 = vmatprep.subr.mxu0 %v760_v23 }
   0xe   : > { %s699_s23 = sshll.u32 %s894_s22, 4  ;;  %s700_s27 = sshll.u32 %s894_s22, 5 }
   0xf   : > { %s291_s26 = scalar_lea.vmem %s886_s0, %s699_s23  ;;  %s296_s30 = scalar_lea.vmem %s887_s1, %s700_s27 }
  0x10   : > { %v812_v0 = vld [vmem:[%s291_s26] sm:$0xff]  ;;  %v814_v1 = vld [vmem:[%s291_s26 + $0x8] sm:$0xff]  ;;  %v821_v3 = vld [vmem:[%s296_s30 + $0x10] sm:$0xff]  ;;  %s301_s9 = scalar_lea.vmem %s888_s2, %s699_s23  ;;  %s306_s12 = scalar_lea.vmem %s889_s3, %s699_s23  ;;  %720 = vmatpush3.msra.mxu0 %v346_v22 }
  0x11   : > { %v322_v2 = vadd.f32 %v814_v1, %v812_v0  ;;  %v823_v4 = vld [vmem:[%s296_s30 + $0x18] sm:$0xff]  ;;  %v825_v5 = vld [vmem:[%s296_s30] sm:$0xff]  ;;  %v835_v7 = vld [vmem:[%s296_s30 + $0x8] sm:$0xff]  ;;  %s735_s27 = smul.u32 80, %s894_s22 }
  0x12   : > { %v328_v6 = vadd.f32 %v823_v4, %v821_v3  ;;  %v837_v8 = vld [vmem:[%s301_s9] sm:$0xff]  ;;  %v839_v9 = vld [vmem:[%s301_s9 + $0x8] sm:$0xff]  ;;  %v325_v10 = vadd.f32 %v835_v7, %v825_v5 }
  0x13   : > { %323 = vadd.xlane.f32.xlu0 %v322_v2  ;;  %v331_v11 = vadd.f32 %v839_v9, %v837_v8  ;;  %v845_v12 = vld [vmem:[%s306_s12] sm:$0xff]  ;;  %v847_v13 = vld [vmem:[%s306_s12 + $0x8] sm:$0xff]  ;;  %v547_v2 = vsub.s32 0, %v355_v26  ;;  %s311_s30 = scalar_lea.vmem %s892_s6, %s735_s27 }
  0x14   : > { %329 = vadd.xlane.f32.xlu1 %v328_v6  ;;  %v334_v14 = vadd.f32 %v847_v13, %v845_v12 }
  0x17   : > { %326 = vadd.xlane.f32.xlu0 %v325_v10 }
  0x18   : > { %332 = vadd.xlane.f32.xlu1 %v331_v11 }
  0x1b   : > { %335 = vadd.xlane.f32.xlu0 %v334_v14 }
  0xa0   : > { %v324_v28 = vpop.xlane.xlu0 %323 }
  0xa1   : > { %v330_v31 = vpop.xlane.xlu1 %329  ;;  %v337_v33 = vmul.f32 0.00390625, %v324_v28 }
  0xa2   : > { %v339_v37 = vmul.f32 0.00390625, %v330_v31 }
  0xa3   : > { %v357_v43 = vrot.slane %v337_v33, %v356_v32 }
  0xa4   : > { %v327_v38 = vpop.xlane.xlu0 %326  ;;  %v369_v46 = vrot.slane %v339_v37, %v368_v36 }
  0xa5   : > { %v338_v40 = vmul.f32 0.00390625, %v327_v38  ;;  %v333_v41 = vpop.xlane.xlu1 %332 }
  0xa6   : > { %v340_v42 = vmul.f32 0.00390625, %v333_v41 }
  0xa7   : > { %v362_v44 = vrot.slane %v338_v40, %v361_v34 }
  0xa8   : > { %v376_v47 = vrot.slane %v340_v42, %v375_v39  ;;  %v336_v48 = vpop.xlane.xlu0 %335 }
  0xa9   : > { %v364_v49 = vsel %vm363_vm1, %v362_v44, %v357_v43  ;;  %v341_v50 = vmul.f32 0.00390625, %v336_v48 }
  0xaa   : > { %v371_v51 = vsel %vm370_vm2, %v369_v46, %v364_v49 }
  0xab   : > { %v383_v52 = vrot.slane %v341_v50, %v382_v45  ;;  %v378_v53 = vsel %vm377_vm3, %v376_v47, %v371_v51 }
  0xad   : > { %v385_v54 = vsel %vm384_vm4, %v383_v52, %v378_v53 }
  0xae   : > { %722 = vmatmul.mubr.msk.f32.vlgmr.msra.gmra.mrb[0].mxu0 %vm386_vm5, %v385_v54 }
 0x181   : > { %v455_v56 = vpop.f32.mrb[0].mxu0 }
 0x182   : > { %v459_v57 = vmax.f32 %v455_v56, 0.0  ;;  %v723_v58 = vpop.f32.mrb[1].mxu0 }
 0x184   : > { %727 = vmatmul.mubr.msk.f32.vlgmr.msra.gmra.mrb[0].mxu1 %vm461_vm7, %v459_v57 }
 0x257   : > { %v535_v59 = vpop.f32.mrb[0].mxu1 }
 0x258   : > { %v696_v60 = vmul.f32 -1.442695, %v535_v59  ;;  %v728_v61 = vpop.f32.mrb[1].mxu1 }
 0x25a   : > { %747 = vpow2.f32 %v696_v60 }
 0x264   : > { %v748_v62 = vpop.eup %747 }
 0x265   : > { %v542_v63 = vadd.f32 1.0, %v748_v62 }
 0x267   : > { %749 = vrcp.f32 %v542_v63 }
 0x271   : > { %v750_v6 = vpop.eup %749 }
 0x272   : > { %v548_v10 = vrot.slane %v750_v6, %v547_v2 }
 0x274   : > { %554 = vbcast.lane.b32.xlu0 %v548_v10, 264  ;;  %550 = vbcast.lane.b32.xlu1 %v548_v10, 256 }
 0x278   : > { %558 = vbcast.lane.b32.xlu1 %v548_v10, 272 }
 0x27c   : > { %562 = vbcast.lane.b32.xlu1 %v548_v10, 280 }
 0x280   : > { %566 = vbcast.lane.b32.xlu1 %v548_v10, 288 }
 0x2e6   : > { %v555_v11 = vpop.permute.xlu0 %554  ;;  %v551_v14 = vpop.permute.xlu1 %550 }
 0x2e7   : > { %v570_v15 = vmul.f32 %v555_v11, %v825_v5  ;;  %v571_v16 = vmul.f32 %v555_v11, %v835_v7  ;;  %v568_v17 = vmul.f32 %v551_v14, %v812_v0  ;;  %v569_v18 = vmul.f32 %v551_v14, %v814_v1 }
 0x2e9   : > { %580 = vst [vmem:[%s311_s30 + $0x10] sm:$0xff] %v570_v15  ;;  %581 = vst [vmem:[%s311_s30 + $0x18] sm:$0xff] %v571_v16 }
 0x2ea   : > { %578 = vst [vmem:[%s311_s30] sm:$0xff] %v568_v17  ;;  %579 = vst [vmem:[%s311_s30 + $0x8] sm:$0xff] %v569_v18  ;;  %v559_v19 = vpop.permute.xlu1 %558 }
 0x2eb   : > { %v572_v20 = vmul.f32 %v559_v19, %v821_v3  ;;  %v573_v21 = vmul.f32 %v559_v19, %v823_v4 }
 0x2ed   : > { %582 = vst [vmem:[%s311_s30 + $0x20] sm:$0xff] %v572_v20  ;;  %583 = vst [vmem:[%s311_s30 + $0x28] sm:$0xff] %v573_v21 }
 0x2ee   : > { %v563_v22 = vpop.permute.xlu1 %562 }
 0x2ef   : > { %v574_v5 = vmul.f32 %v563_v22, %v837_v8  ;;  %v575_v7 = vmul.f32 %v563_v22, %v839_v9 }
 0x2f1   : > { %584 = vst [vmem:[%s311_s30 + $0x30] sm:$0xff] %v574_v5  ;;  %585 = vst [vmem:[%s311_s30 + $0x38] sm:$0xff] %v575_v7 }
 0x2f2   : > { %v567_v0 = vpop.permute.xlu1 %566 }
 0x2f3   : > { %v576_v1 = vmul.f32 %v567_v0, %v845_v12  ;;  %v577_v23 = vmul.f32 %v567_v0, %v847_v13 }
 0x2f5   : > { %586 = vst [vmem:[%s311_s30 + $0x40] sm:$0xff] %v576_v1  ;;  %587 = vst [vmem:[%s311_s30 + $0x48] sm:$0xff] %v577_v23 }
 0x2f6 PF: > { %s16_s21 = sadd.s32 1, %s757_s21  }
 0x2f7   : > { %p13_p4 = scmp.ge.s32.totalorder %s16_s21, 4  }
 0x2f9   :  { %15 = sbr.rel (!%p13_p4) target bundleno = 1 (0x1), region = 83 }

</bundles_post_ra>
